<compile_context>
chip_gen: v6e
topology: v6e:2x2x1
jax: 0.10.0
libtpu: 0.0.40
codegen_flags: <defaults>
</compile_context>

<pallas_src>
import jax
import jax.numpy as jnp
from jax.experimental import pallas as pl
from jax.experimental.pallas import tpu as pltpu


# ---------------------------------------------------------------------------
# Cheap sin (VPU polynomial; the EUP has no sin unit so this is the fast path)
# ---------------------------------------------------------------------------
_INV_2PI = 0.15915494309189535          # 1 / (2*pi)
_PI2_HI = 6.28125                       # high split of 2*pi (8 mantissa bits)
_PI2_LO = 0.0019353071795864769         # 2*pi - _PI2_HI

# Degree-11 odd minimax polynomial for sin on [-pi, pi].
_S1 = 0.9999999999788490
_S3 = -0.16666666608826070
_S5 = 0.008333330720557736
_S7 = -1.9840832823261955e-04
_S9 = 2.7523971074632650e-06
_S11 = -2.3868346521031028e-08


def _fast_sin(x):
    """sin(x) via 1-step Cody-Waite reduction + deg-11 odd minimax poly (~11 VPU ops)."""
    k = jnp.floor(x * _INV_2PI + 0.5)    # round-to-nearest period index
    x = x - k * _PI2_HI
    x = x - k * _PI2_LO
    u = x * x
    p = _S11
    p = p * u + _S9
    p = p * u + _S7
    p = p * u + _S5
    p = p * u + _S3
    p = p * u + _S1
    return x * p


# ---------------------------------------------------------------------------
# Kernel
# ---------------------------------------------------------------------------
def _traj_forward_kernel(params_ref, times_ref, out_ref):
    """out[r, t] = a0[r]*sin(f0[r]*ts[t]) + a1[r]*sin(f1[r]*ts[t]).

    params_ref: (4, R, 1) -- rows 0/1 = freq j=0/1, rows 2/3 = amp j=0/1,
                R = 3*nshots (padded to a multiple of 8) on the sublane axis.
    times_ref : (1, TN)   -- times already divided by tmax (lane-dense).
    out_ref   : (R, TN)   -- lane-dense output tile.
    """
    t = times_ref[...]                   # (1, TN)
    f0 = params_ref[0]                   # (R, 1)  broadcast against lanes is cheap
    f1 = params_ref[1]
    a0 = params_ref[2]
    a1 = params_ref[3]

    # Unrolled j-reduction; two cheap sins + 2 mul + 1 add per element.
    out_ref[...] = a0 * _fast_sin(f0 * t) + a1 * _fast_sin(f1 * t)
    # TODO(synk): traj_to_grad / pns_loss are separate methods (not forward());
    # fusing them here would avoid the (3, nshots, nsamp) HBM round trip.


# ---------------------------------------------------------------------------
# Tiling helpers
# ---------------------------------------------------------------------------
def _round_up(x, m):
    return ((x + m - 1) // m) * m


def _pick_lane_tile(nsamp, sublane_rows):
    """Lane tile (multiple of 128).

    Large enough to amortize the ~0.35us/step pipeline overhead, small enough
    that the double-buffered (rows x TN) output + times tiles stay within half
    of v5e's 16 MiB scoped-VMEM default, and chosen so the grid has >= 2
    (ideally an even number of) steps for v7x's 2 TensorCores.
    """
    vmem_budget = 8 << 20                                   # conservative on all gens
    cap = (vmem_budget // (8 * (sublane_rows + 1)) // 128) * 128
    cap = int(max(128, min(cap, 8192)))
    if nsamp <= 128:
        return 128
    # Largest tile that still yields >= 2 grid steps.
    tn = max(128, min(cap, _round_up((nsamp + 1) // 2, 128)))
    # Nudge to an even step count when it costs nothing (2-TC load balance).
    steps = -(-nsamp // tn)
    if steps > 1 and steps % 2 == 1:
        tn_even = max(128, _round_up(-(-nsamp // (steps + 1)), 128))
        if -(-nsamp // tn_even) % 2 == 0:
            tn = tn_even
    return tn


# ---------------------------------------------------------------------------
# Wrapper
# ---------------------------------------------------------------------------
def trajectory_forward(kspace_freq, kspace_amp, times, tmax):
    """Pallas implementation of TrajectoryModel.forward()."""
    three, two, nshots = kspace_freq.shape
    assert three == 3 and two == 2
    nsamp = times.shape[0]

    rows = 3 * nshots
    rows_pad = _round_up(rows, 8)        # dense sublane packing for any nshots

    # Fuse (channel, shot) -> one sublane axis; combine freq & amp into one
    # tiny constant-index param block (row-major so out.reshape(3,nshots,...)
    # is free afterwards).  All of this is cheap XLA work on ~192 B of data.
    freq2 = jnp.transpose(kspace_freq.astype(jnp.float32), (1, 0, 2)).reshape(2, rows)
    amp2 = jnp.transpose(kspace_amp.astype(jnp.float32), (1, 0, 2)).reshape(2, rows)
    params = jnp.concatenate([freq2, amp2], axis=0)           # (4, 3*nshots)
    if rows_pad != rows:
        params = jnp.pad(params, ((0, 0), (0, rows_pad - rows)))
    params = params[..., None]                                 # (4, R, 1)

    tn = _pick_lane_tile(nsamp, rows_pad)
    nsamp_pad = _round_up(nsamp, tn)                           # keep stores lane-dense
    # Pre-scale times by 1/tmax in the wrapper (benign FP reassociation; works
    # even when tmax is a traced scalar).
    times_scaled = (times.astype(jnp.float32) / tmax).reshape(1, nsamp)
    if nsamp_pad != nsamp:
        times_scaled = jnp.pad(times_scaled, ((0, 0), (0, nsamp_pad - nsamp)))

    grid = (nsamp_pad // tn,)

    cost = pl.CostEstimate(
        flops=25 * rows_pad * nsamp_pad,                       # 2 poly sins + 2 mul + 1 add
        transcendentals=0,                                     # no libm sin anymore
        bytes_accessed=4 * (rows_pad * nsamp_pad + nsamp_pad + 4 * rows_pad),
    )

    out = pl.pallas_call(
        _traj_forward_kernel,
        out_shape=jax.ShapeDtypeStruct((rows_pad, nsamp_pad), jnp.float32),
        grid=grid,
        in_specs=[
            # Tiny params: constant block index -> Mosaic skips re-DMA per step.
            pl.BlockSpec((4, rows_pad, 1), lambda i: (0, 0, 0)),
            # Scaled times: lane-dense tile over nsamp.
            pl.BlockSpec((1, tn), lambda i: (0, i)),
        ],
        # Lane-dense output tile (multiple-of-128 lanes -> unmasked vst).
        out_specs=pl.BlockSpec((rows_pad, tn), lambda i: (0, i)),
        compiler_params=pltpu.CompilerParams(
            # Shards the (even) grid across v7x's 2 TensorCores; no-op on v5e/v6e.
            dimension_semantics=("parallel",),
        ),
        cost_estimate=cost,
    )(params, times_scaled)

    # Undo the padding (no-op when shapes already aligned) and split channels.
    return out[:rows, :nsamp].reshape(3, nshots, nsamp)


def trajectory_forward_ref(kspace_freq, kspace_amp, times, tmax):
    """Pure-JAX reference mirroring the PyTorch forward."""
    nsamp = times.shape[0]
    phase = kspace_freq[..., None] * times.reshape(1, 1, 1, nsamp) / tmax
    kspace = kspace_amp[..., None] * jnp.sin(phase)
    return jnp.sum(kspace, axis=1)


if __name__ == "__main__":
    # Small config consistent with the module: nshots=8; nsamp=2048 so the
    # lane-tiled grid takes 2 steps (tile=1024 -> grid=(2,), even for 2 TCs).
    nshots = 8
    nsamp = 2048
    grad_raster_time = 4e-06
    tmax = nsamp * grad_raster_time

    # Deterministic "parameters" (torch.rand -> uniform [0, 1)).
    key = jax.random.PRNGKey(0)
    kf, ka = jax.random.split(key)
    kspace_freq = jax.random.uniform(kf, (3, 2, nshots), dtype=jnp.float32)
    kspace_amp = jax.random.uniform(ka, (3, 2, nshots), dtype=jnp.float32)

    # self.times = grad_raster_time * arange(nsamp)
    times = grad_raster_time * jnp.arange(nsamp, dtype=jnp.float32)

    out = trajectory_forward(kspace_freq, kspace_amp, times, tmax)
    out = jax.block_until_ready(out)

    ref = trajectory_forward_ref(kspace_freq, kspace_amp, times, tmax)
    assert out.shape == (3, nshots, nsamp)
    assert jnp.allclose(out, ref, atol=1e-5, rtol=1e-5)

    # TODO(synk): traj_to_grad / pns_loss are not part of forward(); the real win
    # at production sizes is fusing them into this kernel so the trajectory never
    # round-trips HBM (and, on v5e, optionally emitting bf16 to halve store bytes).
    print("KERNEL_OK")
</pallas_src>

<mosaic_0001>
module attributes {stable_mosaic.version = 11 : i64} {
  func.func @_traj_forward_kernel(%arg0: i32, %arg1: memref<4x24x1xf32, #tpu.memory_space<vmem>>, %arg2: memref<1x1024xf32, #tpu.memory_space<vmem>>, %arg3: memref<24x1024xf32, #tpu.memory_space<vmem>>) attributes {dimension_semantics = [#tpu.dimension_semantics<parallel>], iteration_bounds = array<i64: 2>, scalar_prefetch = 0 : i64, scratch_operands = 0 : i64, tpu.core_type = #tpu.core_type<tc>, window_params = [{pipeline_mode = #tpu.pipeline_mode<synchronous>, transform_indices = @transform_0, window_bounds = array<i64: 4, 24, 1>}, {transform_indices = @transform_1, window_bounds = array<i64: 1, 1024>}, {transform_indices = @transform_2, window_bounds = array<i64: 24, 1024>}]} {
    %c0 = arith.constant 0 : index
    %c0_0 = arith.constant 0 : index
    %0 = vector.load %arg2[%c0, %c0_0] : memref<1x1024xf32, #tpu.memory_space<vmem>>, vector<1x1024xf32>
    %c0_1 = arith.constant 0 : index
    %c0_2 = arith.constant 0 : index
    %c0_3 = arith.constant 0 : index
    %1 = vector.load %arg1[%c0_1, %c0_2, %c0_3] : memref<4x24x1xf32, #tpu.memory_space<vmem>>, vector<1x24x1xf32>
    %2 = vector.shape_cast %1 : vector<1x24x1xf32> to vector<24x1xf32>
    %c1 = arith.constant 1 : index
    %c0_4 = arith.constant 0 : index
    %c0_5 = arith.constant 0 : index
    %3 = vector.load %arg1[%c1, %c0_4, %c0_5] : memref<4x24x1xf32, #tpu.memory_space<vmem>>, vector<1x24x1xf32>
    %4 = vector.shape_cast %3 : vector<1x24x1xf32> to vector<24x1xf32>
    %c2 = arith.constant 2 : index
    %c0_6 = arith.constant 0 : index
    %c0_7 = arith.constant 0 : index
    %5 = vector.load %arg1[%c2, %c0_6, %c0_7] : memref<4x24x1xf32, #tpu.memory_space<vmem>>, vector<1x24x1xf32>
    %6 = vector.shape_cast %5 : vector<1x24x1xf32> to vector<24x1xf32>
    %c3 = arith.constant 3 : index
    %c0_8 = arith.constant 0 : index
    %c0_9 = arith.constant 0 : index
    %7 = vector.load %arg1[%c3, %c0_8, %c0_9] : memref<4x24x1xf32, #tpu.memory_space<vmem>>, vector<1x24x1xf32>
    %8 = vector.shape_cast %7 : vector<1x24x1xf32> to vector<24x1xf32>
    %9 = vector.broadcast %2 : vector<24x1xf32> to vector<24x1024xf32>
    %10 = vector.broadcast %0 : vector<1x1024xf32> to vector<24x1024xf32>
    %11 = arith.mulf %9, %10 : vector<24x1024xf32>
    %cst = arith.constant 0.159154937 : f32
    %12 = vector.broadcast %cst : f32 to vector<24x1024xf32>
    %13 = arith.mulf %11, %12 : vector<24x1024xf32>
    %cst_10 = arith.constant 5.000000e-01 : f32
    %14 = vector.broadcast %cst_10 : f32 to vector<24x1024xf32>
    %15 = arith.addf %13, %14 : vector<24x1024xf32>
    %16 = math.floor %15 : vector<24x1024xf32>
    %cst_11 = arith.constant 6.281250e+00 : f32
    %17 = vector.broadcast %cst_11 : f32 to vector<24x1024xf32>
    %18 = arith.mulf %16, %17 : vector<24x1024xf32>
    %19 = arith.subf %11, %18 : vector<24x1024xf32>
    %cst_12 = arith.constant 0.00193530717 : f32
    %20 = vector.broadcast %cst_12 : f32 to vector<24x1024xf32>
    %21 = arith.mulf %16, %20 : vector<24x1024xf32>
    %22 = arith.subf %19, %21 : vector<24x1024xf32>
    %23 = arith.mulf %22, %22 : vector<24x1024xf32>
    %cst_13 = arith.constant -2.38683473E-8 : f32
    %24 = vector.broadcast %cst_13 : f32 to vector<24x1024xf32>
    %25 = arith.mulf %24, %23 : vector<24x1024xf32>
    %cst_14 = arith.constant 2.75239699E-6 : f32
    %26 = vector.broadcast %cst_14 : f32 to vector<24x1024xf32>
    %27 = arith.addf %25, %26 : vector<24x1024xf32>
    %28 = arith.mulf %27, %23 : vector<24x1024xf32>
    %cst_15 = arith.constant -1.98408321E-4 : f32
    %29 = vector.broadcast %cst_15 : f32 to vector<24x1024xf32>
    %30 = arith.addf %28, %29 : vector<24x1024xf32>
    %31 = arith.mulf %30, %23 : vector<24x1024xf32>
    %cst_16 = arith.constant 0.00833333097 : f32
    %32 = vector.broadcast %cst_16 : f32 to vector<24x1024xf32>
    %33 = arith.addf %31, %32 : vector<24x1024xf32>
    %34 = arith.mulf %33, %23 : vector<24x1024xf32>
    %cst_17 = arith.constant -0.166666672 : f32
    %35 = vector.broadcast %cst_17 : f32 to vector<24x1024xf32>
    %36 = arith.addf %34, %35 : vector<24x1024xf32>
    %37 = arith.mulf %36, %23 : vector<24x1024xf32>
    %cst_18 = arith.constant 1.000000e+00 : f32
    %38 = vector.broadcast %cst_18 : f32 to vector<24x1024xf32>
    %39 = arith.addf %37, %38 : vector<24x1024xf32>
    %40 = arith.mulf %22, %39 : vector<24x1024xf32>
    %41 = vector.broadcast %6 : vector<24x1xf32> to vector<24x1024xf32>
    %42 = arith.mulf %41, %40 : vector<24x1024xf32>
    %43 = vector.broadcast %4 : vector<24x1xf32> to vector<24x1024xf32>
    %44 = vector.broadcast %0 : vector<1x1024xf32> to vector<24x1024xf32>
    %45 = arith.mulf %43, %44 : vector<24x1024xf32>
    %cst_19 = arith.constant 0.159154937 : f32
    %46 = vector.broadcast %cst_19 : f32 to vector<24x1024xf32>
    %47 = arith.mulf %45, %46 : vector<24x1024xf32>
    %cst_20 = arith.constant 5.000000e-01 : f32
    %48 = vector.broadcast %cst_20 : f32 to vector<24x1024xf32>
    %49 = arith.addf %47, %48 : vector<24x1024xf32>
    %50 = math.floor %49 : vector<24x1024xf32>
    %cst_21 = arith.constant 6.281250e+00 : f32
    %51 = vector.broadcast %cst_21 : f32 to vector<24x1024xf32>
    %52 = arith.mulf %50, %51 : vector<24x1024xf32>
    %53 = arith.subf %45, %52 : vector<24x1024xf32>
    %cst_22 = arith.constant 0.00193530717 : f32
    %54 = vector.broadcast %cst_22 : f32 to vector<24x1024xf32>
    %55 = arith.mulf %50, %54 : vector<24x1024xf32>
    %56 = arith.subf %53, %55 : vector<24x1024xf32>
    %57 = arith.mulf %56, %56 : vector<24x1024xf32>
    %cst_23 = arith.constant -2.38683473E-8 : f32
    %58 = vector.broadcast %cst_23 : f32 to vector<24x1024xf32>
    %59 = arith.mulf %58, %57 : vector<24x1024xf32>
    %cst_24 = arith.constant 2.75239699E-6 : f32
    %60 = vector.broadcast %cst_24 : f32 to vector<24x1024xf32>
    %61 = arith.addf %59, %60 : vector<24x1024xf32>
    %62 = arith.mulf %61, %57 : vector<24x1024xf32>
    %cst_25 = arith.constant -1.98408321E-4 : f32
    %63 = vector.broadcast %cst_25 : f32 to vector<24x1024xf32>
    %64 = arith.addf %62, %63 : vector<24x1024xf32>
    %65 = arith.mulf %64, %57 : vector<24x1024xf32>
    %cst_26 = arith.constant 0.00833333097 : f32
    %66 = vector.broadcast %cst_26 : f32 to vector<24x1024xf32>
    %67 = arith.addf %65, %66 : vector<24x1024xf32>
    %68 = arith.mulf %67, %57 : vector<24x1024xf32>
    %cst_27 = arith.constant -0.166666672 : f32
    %69 = vector.broadcast %cst_27 : f32 to vector<24x1024xf32>
    %70 = arith.addf %68, %69 : vector<24x1024xf32>
    %71 = arith.mulf %70, %57 : vector<24x1024xf32>
    %cst_28 = arith.constant 1.000000e+00 : f32
    %72 = vector.broadcast %cst_28 : f32 to vector<24x1024xf32>
    %73 = arith.addf %71, %72 : vector<24x1024xf32>
    %74 = arith.mulf %56, %73 : vector<24x1024xf32>
    %75 = vector.broadcast %8 : vector<24x1xf32> to vector<24x1024xf32>
    %76 = arith.mulf %75, %74 : vector<24x1024xf32>
    %77 = arith.addf %42, %76 : vector<24x1024xf32>
    %c0_29 = arith.constant 0 : index
    %c0_30 = arith.constant 0 : index
    %78 = vector.load %arg3[%c0_29, %c0_30] : memref<24x1024xf32, #tpu.memory_space<vmem>>, vector<24x1024xf32>
    tpu.vector_store %arg3[%c0_29, %c0_30], %77 {strides = array<i32>} : memref<24x1024xf32, #tpu.memory_space<vmem>>, vector<24x1024xf32>,
    return
  }
  func.func @transform_0(%arg0: i32) -> (i32, i32, i32) {
    %c0_i32 = arith.constant 0 : i32
    %c0_i32_0 = arith.constant 0 : i32
    %c0_i32_1 = arith.constant 0 : i32
    %c0_i32_2 = arith.constant 0 : i32
    return %c0_i32, %c0_i32_0, %c0_i32_1 : i32, i32, i32
  }
  func.func @transform_1(%arg0: i32) -> (i32, i32) {
    %c0_i32 = arith.constant 0 : i32
    %c0_i32_0 = arith.constant 0 : i32
    return %c0_i32, %arg0 : i32, i32
  }
  func.func @transform_2(%arg0: i32) -> (i32, i32) {
    %c0_i32 = arith.constant 0 : i32
    %c0_i32_0 = arith.constant 0 : i32
    return %c0_i32, %arg0 : i32, i32
  }
}

</mosaic_0001>

<bundles_post_ra>
// kernel: tpu_custom_call.1
= control target key start
LH: loop header
LB: loop body
LE: loop exit
PB: predicated region body
PF: predicated region fallthrough
CT: control target
= control target key end

     0   :  { %7 = vsyncpa [#allocation3], 0  ;;  %s3108_s0 = inlined_call_operand.vmem [shape: f32[4,24,1], index: 0, kind: input, shape index: {}]   ;;  %s3109_s1 = inlined_call_operand.vmem [shape: f32[1,2048], index: 1, kind: input, shape index: {}]   ;;  %s3110_s2 = inlined_call_operand.hbm [shape: f32[24,2048], index: 2, kind: output, shape index: {}]  }
   0x1   :  { %9 = vsyncpa [#allocation3 + $0x1], 0  ;;  %s1535_s9 = smov 0   ;;  %s1537_s10 = smov 0  }
   0x2   :  { %s1539_s11 = smov 0   ;;  %s1541_s12 = smov 0  }
   0x3 LB: > { %s1556_s13 = sadd.s32 4294967295, %s1513_s12   ;;  %s1388_s14 = sadd.s32 4294967294, %s1513_s12   ;;  %s1513_s12 = sphi %s1541_s12, %s3453_s12   ;;  %s1509_s11 = sphi %s1539_s11, %s3452_s11   ;;  %s1505_s10 = sphi %s1537_s10, %s3451_s10   ;;  %s1501_s9 = sphi %s1535_s9, %s3450_s9  }
   0x4   : > { %s1560_s15 = sadd.s32 1, %s1513_s12   ;;  %s69_s16 = sadd.s32 1, %s1509_s11 }
   0x5   : > { %s66_s17 = ssub.s32 %s1513_s12, %s1560_s15  ;;  %p79_p0 = scmp.ne.s32.totalorder %s1509_s11, %s1505_s10 }
   0x6   : > { %p67_p1 = scmp.eq.s32.totalorder %s66_s17, 0  ;;  %p80_p2 = scmp.eq.s32.totalorder %s1556_s13, 1 }
   0x7   : > { %p85_p3 = scmp.ne.s32.totalorder %s1505_s10, %s1501_s9  ;;  %p86_p4 = scmp.eq.s32.totalorder %s1388_s14, 1 }
   0x8   : > { %s1571_s18 = scalar_select %p67_p1, %s1509_s11, %s69_s16  }
   0x9   : > { %p1573_p5 = por %p80_p2, %p79_p0  ;;  %p1577_p6 = por %p86_p4, %p85_p3 }
   0xa   : > { %p1391_p7 = scmp.ge.s32.totalorder %s1513_s12, 1  ;;  %p115_p8 = scmp.lt.s32.totalorder %s1513_s12, 3 }
   0xc   : > { %p116_p9 = pnand %p1391_p7, %p115_p8 }
   0xe   : > { %119 = sbr.rel (%p116_p9) target bundleno = 438 (0x1b6), region = 28 }
  0x13   : > { %v145_v0 = vld [vmem:[%s3108_s0 + $0x10] sm:$0xff]  ;;  %v143_v1 = vld [vmem:[%s3108_s0] sm:$0xff]  ;;  %v1515_v2 = vmov 0   ;;  %v1393_v3 = vld [vmem:[%s3108_s0 + $0x18] sm:$0xff]  ;;  %s1392_s26 = sshll.u32 %s1556_s13, 3  ;;  %v174_v13 = vlaneseq  ;;  %s133_s30 = sand.u32 1, %s1505_s10  }
  0x14   : > { %1452 = vset.pattern.permute.xlu1 %v1515_v2  ;;  %1451 = vset.pattern.permute.xlu0 %v1515_v2  ;;  %v144_v4 = vld [vmem:[%s3108_s0 + $0x8] sm:$0xff]  ;;  %v1394_v6 = vld [vmem:[%s3108_s0 + $0x20] sm:$0xff]  ;;  %v1397_v7 = vld [vmem:[%s3108_s0 + $0x38] sm:$0xff]  ;;  %p137_p10 = scmp.lt.s32.totalorder %s1392_s26, 15  ;;  %s2469_s3 = smul.u32 192, %s133_s30 }
  0x15   : > { %170 = vperm.xlu1 %1452, %v145_v0   ;;  %160 = vperm.xlu0 %1451, %v143_v1   ;;  %v1395_v5 = vld [vmem:[%s3108_s0 + $0x28] sm:$0xff]  ;;  %v1396_v8 = vld [vmem:[%s3108_s0 + $0x30] sm:$0xff]  ;;  %v1398_v10 = vld [vmem:[%s3108_s0 + $0x40] sm:$0xff]  ;;  %v175_v14 = vshrl.u32 %v174_v13, 7  ;;  %s1406_s5 = sshll.u32 %s1556_s13, 10  ;;  %s3068_s14 = scalar_lea.sflag [#allocation3], %s133_s30 }
  0x16   : > { %v1399_v9 = vld [vmem:[%s3108_s0 + $0x48] sm:$0xff]  ;;  %v1401_v11 = vld [vmem:[%s3108_s0 + $0x58] sm:$0xff]  ;;  %v1400_v12 = vld [vmem:[%s3108_s0 + $0x50] sm:$0xff]  ;;  %s3455_s26 = smov (!%p137_p10, %s1392_s26), 15  ;;  %s2488_s4 = scalar_lea.vmem [#allocation2], %s2469_s3 }
  0x17   : > { %s139_s29 = scalar_lea.vmem %s3109_s1, %s3455_s26  ;;  %v176_v15 = vsub.s32 0, %v175_v14  ;;  %v180_v16 = vsub.s32 1, %v175_v14  ;;  %v184_v17 = vsub.s32 2, %v175_v14  ;;  %v188_v18 = vsub.s32 3, %v175_v14  ;;  %s1329_s6 = sshll.u32 %s2488_s4, 4  ;;  %s3056_s6 = int_to_ptr.vmem [resolvable:$true] %s1329_s6 }
  0x18   : > { %v192_v19 = vsub.s32 4, %v175_v14  ;;  %v196_v20 = vsub.s32 5, %v175_v14  ;;  %v200_v21 = vsub.s32 6, %v175_v14  ;;  %v204_v22 = vsub.s32 7, %v175_v14  ;;  %v142_v23 = vld [vmem:[%s139_s29] sm:$0xff]  ;;  %s3050_s8 = scalar_lea.hbm %s3110_s2, %s1406_s5  ;;  %s1453_s16 = scalar_lea.vmem %s3056_s6, 3072 }
  0x19   : > { %735 = vperm.xlu1 %1452, %v1393_v3   ;;  %165 = vperm.xlu0 %1451, %v144_v4   ;;  %v1623_v24 = vrot.slane %v142_v23, %v176_v15  ;;  %v1625_v25 = vrot.slane %v142_v23, %v180_v16  ;;  %v1627_v26 = vrot.slane %v142_v23, %v184_v17  ;;  %p1454_p11 = scmp.ne.s32.totalorder %s3056_s6, %s1453_s16  ;;  %s1516_s17 = smov [#allocation2]  }
  0x1a   : > { %v1629_v27 = vrot.slane %v142_v23, %v188_v18  ;;  %v1631_v28 = vrot.slane %v142_v23, %v192_v19  ;;  %v1633_v29 = vrot.slane %v142_v23, %v196_v20  ;;  %v1635_v30 = vrot.slane %v142_v23, %v200_v21  ;;  %s1457_s21 = sshll.u32 %s1516_s17, 4  ;;  %s1458_s21 = int_to_ptr.vmem [resolvable:$false] %s1457_s21 }
  0x1b   : > { %v1637_v31 = vrot.slane %v142_v23, %v204_v22  ;;  %p1455_p12 = pnand %p1454_p11, %p1573_p5  ;;  %s1459_s22 = scalar_lea.vmem %s1458_s21, 6144 }
  0x1c   : > { %p1460_p0 = scmp.lt.s32.totalorder %s3056_s6, %s1458_s21  ;;  %p1461_p1 = scmp.lt.s32.totalorder %s1459_s22, %s1453_s16 }
  0x1d   : > { %745 = vperm.xlu1 %1452, %v1395_v5   ;;  %740 = vperm.xlu0 %1451, %v1394_v6   ;;  %p1456_p13 = pneg %p1455_p12 }
  0x1e   : > { %p1462_p2 = por %p1461_p1, %p1460_p0 }
  0x20   : > { %p1463_p3 = pnand %p1462_p2, %p1456_p13 }
  0x21   : > { %701 = vperm.xlu1 %1452, %v1397_v7   ;;  %696 = vperm.xlu0 %1451, %v1396_v8  }
  0x25   : > { %1230 = vperm.xlu1 %1452, %v1399_v9   ;;  %706 = vperm.xlu0 %1451, %v1398_v10  }
  0x29   : > { %1240 = vperm.xlu1 %1452, %v1401_v11   ;;  %1235 = vperm.xlu0 %1451, %v1400_v12  }
  0x90   : > { %v171_v32 = vpop.permute.xlu1 %170  ;;  %v161_v3 = vpop.permute.xlu0 %160 }
  0x91   : > { %v1640_v33 = vmul.f32 %v1623_v24, %v171_v32  ;;  %v1643_v34 = vmul.f32 %v1625_v25, %v171_v32  ;;  %v1646_v35 = vmul.f32 %v1627_v26, %v171_v32  ;;  %v1649_v36 = vmul.f32 %v1629_v27, %v171_v32 }
  0x92   : > { %v1652_v37 = vmul.f32 %v1631_v28, %v171_v32  ;;  %v1655_v38 = vmul.f32 %v1633_v29, %v171_v32  ;;  %v1658_v39 = vmul.f32 %v1635_v30, %v171_v32  ;;  %v1661_v40 = vmul.f32 %v1637_v31, %v171_v32 }
  0x93   : > { %3194 = vst [vmem:[#allocation5_spill] sm:$0xff] %v1640_v33  ;;  %3195 = vst [vmem:[#allocation6_spill] sm:$0xff] %v1643_v34  ;;  %v254_v41 = vmul.f32 0.15915494, %v1640_v33  ;;  %v255_v42 = vmul.f32 0.15915494, %v1643_v34  ;;  %v1701_v8 = vmul.f32 %v1623_v24, %v161_v3  ;;  %v1704_v9 = vmul.f32 %v1625_v25, %v161_v3 }
  0x94   : > { %3196 = vst [vmem:[#allocation7_spill] sm:$0xff] %v1646_v35  ;;  %3197 = vst [vmem:[#allocation8_spill] sm:$0xff] %v1649_v36  ;;  %v256_v43 = vmul.f32 0.15915494, %v1646_v35  ;;  %v257_v44 = vmul.f32 0.15915494, %v1649_v36  ;;  %v1725_v17 = vmul.f32 %v1627_v26, %v161_v3  ;;  %v1734_v21 = vmul.f32 %v1629_v27, %v161_v3 }
  0x95   : > { %3198 = vst [vmem:[#allocation9_spill] sm:$0xff] %v1652_v37  ;;  %3199 = vst [vmem:[#allocation10_spill] sm:$0xff] %v1655_v38  ;;  %v258_v45 = vmul.f32 0.15915494, %v1652_v37  ;;  %v259_v46 = vmul.f32 0.15915494, %v1655_v38  ;;  %v1737_v22 = vmul.f32 %v1631_v28, %v161_v3  ;;  %v1740_v23 = vmul.f32 %v1633_v29, %v161_v3 }
  0x96   : > { %3200 = vst [vmem:[#allocation11_spill] sm:$0xff] %v1658_v39  ;;  %3201 = vst [vmem:[#allocation12_spill] sm:$0xff] %v1661_v40  ;;  %v260_v47 = vmul.f32 0.15915494, %v1658_v39  ;;  %v261_v48 = vmul.f32 0.15915494, %v1661_v40  ;;  %v1743_v32 = vmul.f32 %v1635_v30, %v161_v3 }
  0x97   : > { %v278_v49 = vadd.f32 0.5, %v254_v41  ;;  %v279_v50 = vadd.f32 0.5, %v255_v42  ;;  %v280_v51 = vadd.f32 0.5, %v256_v43  ;;  %v1671_v52 = vadd.f32 0.5, %v257_v44  ;;  %3213 = vst [vmem:[#allocation24_spill] sm:$0xff] %v1740_v23 }
  0x98   : > { %v1673_v53 = vadd.f32 0.5, %v258_v45  ;;  %v1675_v54 = vadd.f32 0.5, %v259_v46  ;;  %v1677_v55 = vadd.f32 0.5, %v260_v47  ;;  %v1679_v56 = vadd.f32 0.5, %v261_v48  ;;  %3214 = vst [vmem:[#allocation25_spill] sm:$0xff] %v1743_v32 }
  0x99   : > { %v302_v57 = vfloor.f32 %v278_v49  ;;  %v303_v58 = vfloor.f32 %v279_v50  ;;  %v304_v59 = vfloor.f32 %v280_v51  ;;  %v305_v60 = vfloor.f32 %v1671_v52 }
  0x9a   : > { %v306_v61 = vfloor.f32 %v1673_v53  ;;  %v307_v62 = vfloor.f32 %v1675_v54  ;;  %v308_v63 = vfloor.f32 %v1677_v55  ;;  %v309_v0 = vfloor.f32 %v1679_v56 }
  0x9b   : > { %v1686_v1 = vmul.f32 6.28125, %v302_v57  ;;  %v1688_v2 = vmul.f32 6.28125, %v303_v58  ;;  %v1690_v4 = vmul.f32 6.28125, %v304_v59  ;;  %v1692_v5 = vmul.f32 6.28125, %v305_v60 }
  0x9c   : > { %v1696_v6 = vmul.f32 6.28125, %v306_v61  ;;  %v1698_v7 = vmul.f32 6.28125, %v307_v62  ;;  %v1708_v10 = vmul.f32 6.28125, %v308_v63  ;;  %v1712_v11 = vmul.f32 6.28125, %v309_v0 }
  0x9d   : > { %3202 = vst [vmem:[#allocation13_spill] sm:$0xff] %v1686_v1  ;;  %3203 = vst [vmem:[#allocation14_spill] sm:$0xff] %v1688_v2  ;;  %v1727_v18 = vmul.f32 0.0019353072, %v302_v57  ;;  %v1729_v19 = vmul.f32 0.0019353072, %v303_v58  ;;  %v1746_v41 = vmul.f32 %v1637_v31, %v161_v3 }
  0x9e   : > { %3204 = vst [vmem:[#allocation15_spill] sm:$0xff] %v1690_v4  ;;  %3205 = vst [vmem:[#allocation16_spill] sm:$0xff] %v1692_v5  ;;  %v1731_v20 = vmul.f32 0.0019353072, %v304_v59  ;;  %v238_v43 = vmul.f32 0.15915494, %v1701_v8 }
  0x9f   : > { %3206 = vst [vmem:[#allocation17_spill] sm:$0xff] %v1696_v6  ;;  %3207 = vst [vmem:[#allocation18_spill] sm:$0xff] %v1698_v7  ;;  %v239_v44 = vmul.f32 0.15915494, %v1704_v9  ;;  %v240_v45 = vmul.f32 0.15915494, %v1725_v17 }
  0xa0   : > { %3208 = vst [vmem:[#allocation19_spill] sm:$0xff] %v1708_v10  ;;  %3209 = vst [vmem:[#allocation20_spill] sm:$0xff] %v1712_v11  ;;  %v241_v47 = vmul.f32 0.15915494, %v1734_v21  ;;  %v242_v48 = vmul.f32 0.15915494, %v1737_v22 }
  0xa1   : > { %3210 = vst [vmem:[#allocation21_spill] sm:$0xff] %v1727_v18  ;;  %3211 = vst [vmem:[#allocation22_spill] sm:$0xff] %v1729_v19  ;;  %v243_v49 = vmul.f32 0.15915494, %v1740_v23  ;;  %v244_v50 = vmul.f32 0.15915494, %v1743_v32 }
  0xa2   : > { %3212 = vst [vmem:[#allocation23_spill] sm:$0xff] %v1731_v20  ;;  %3215 = vst [vmem:[#allocation26_spill] sm:$0xff] %v1746_v41  ;;  %v245_v51 = vmul.f32 0.15915494, %v1746_v41  ;;  %v262_v52 = vadd.f32 0.5, %v238_v43  ;;  %v263_v54 = vadd.f32 0.5, %v239_v44 }
  0xa3   : > { %v1760_v57 = vadd.f32 0.5, %v240_v45  ;;  %v1762_v58 = vadd.f32 0.5, %v241_v47  ;;  %v1764_v59 = vadd.f32 0.5, %v242_v48  ;;  %v1766_v3 = vadd.f32 0.5, %v243_v49 }
  0xa4   : > { %v1768_v46 = vadd.f32 0.5, %v244_v50  ;;  %v1770_v42 = vadd.f32 0.5, %v245_v51  ;;  %v286_v16 = vfloor.f32 %v262_v52  ;;  %v287_v15 = vfloor.f32 %v263_v54  ;;  %v736_v50 = vpop.permute.xlu1 %735 }
  0xa5   : > { %v3111_v14 = vfloor.f32 %v1760_v57  ;;  %v3112_v13 = vfloor.f32 %v1762_v58  ;;  %v3113_v43 = vfloor.f32 %v1764_v59  ;;  %v3114_v44 = vfloor.f32 %v1766_v3 }
  0xa6   : > { %v1778_v48 = vmul.f32 6.28125, %v286_v16  ;;  %v1780_v49 = vmul.f32 6.28125, %v287_v15  ;;  %v1782_v51 = vmul.f32 0.0019353072, %v305_v60  ;;  %v1800_v45 = vmul.f32 0.0019353072, %v306_v61 }
  0xa7   : > { %v1786_v52 = vmul.f32 6.28125, %v3111_v14  ;;  %v1790_v54 = vmul.f32 6.28125, %v3112_v13  ;;  %v1794_v12 = vmul.f32 6.28125, %v3113_v43  ;;  %v1802_v60 = vmul.f32 0.0019353072, %v307_v62 }
  0xa8   : > { %3216 = vst [vmem:[#allocation27_spill] sm:$0xff] %v1782_v51  ;;  %3217 = vst [vmem:[#allocation28_spill] sm:$0xff] %v1800_v45  ;;  %v1806_v14 = vmul.f32 6.28125, %v3114_v44  ;;  %v1810_v13 = vmul.f32 0.0019353072, %v308_v63  ;;  %v1817_v47 = vmul.f32 %v736_v50, %v1623_v24  ;;  %v1820_v53 = vmul.f32 %v736_v50, %v1625_v25 }
  0xa9   : > { %3218 = vst [vmem:[#allocation29_spill] sm:$0xff] %v1802_v60  ;;  %v1814_v43 = vmul.f32 0.0019353072, %v309_v0  ;;  %v3224_v61 = vfloor.f32 %v1768_v46  ;;  %v3226_v44 = vfloor.f32 %v1770_v42  ;;  %v1841_v40 = vmul.f32 %v736_v50, %v1627_v26 }
  0xaa   : > { %3219 = vst [vmem:[#allocation30_spill] sm:$0xff] %v1806_v14  ;;  %3220 = vst [vmem:[#allocation31_spill] sm:$0xff] %v1810_v13  ;;  %v1849_v56 = vmul.f32 0.0019353072, %v287_v15  ;;  %v1852_v63 = vmul.f32 %v736_v50, %v1629_v27  ;;  %v1855_v0 = vmul.f32 %v736_v50, %v1631_v28  ;;  %v1861_v10 = vmul.f32 %v736_v50, %v1635_v30 }
  0xab   : > { %3221 = vst [vmem:[#allocation32_spill] sm:$0xff] %v1814_v43  ;;  %3222 = vst [vmem:[#allocation33_spill] sm:$0xff] %v1817_v47  ;;  %v1824_v62 = vmul.f32 6.28125, %v3224_v61  ;;  %v1828_v11 = vmul.f32 6.28125, %v3226_v44  ;;  %v1843_v44 = vpop.permute.xlu0 %165  ;;  %v1847_v43 = vmul.f32 0.0019353072, %v286_v16  ;;  %v1858_v61 = vmul.f32 %v736_v50, %v1633_v29 }
  0xac   : > { %3223 = vst [vmem:[#allocation34_spill] sm:$0xff] %v1820_v53  ;;  %3228 = vst [vmem:[#allocation37_spill] sm:$0xff] %v1841_v40  ;;  %v1864_v39 = vmul.f32 %v736_v50, %v1637_v31  ;;  %v772_v16 = vmul.f32 0.15915494, %v1817_v47  ;;  %v773_v15 = vmul.f32 0.15915494, %v1820_v53  ;;  %v1871_v13 = vmul.f32 %v1623_v24, %v1843_v44 }
  0xad   : > { %3225 = vst [vmem:[#allocation35_spill] sm:$0xff] %v1824_v62  ;;  %3227 = vst [vmem:[#allocation36_spill] sm:$0xff] %v1828_v11  ;;  %v774_v55 = vmul.f32 0.15915494, %v1841_v40  ;;  %v775_v7 = vmul.f32 0.15915494, %v1852_v63  ;;  %v1878_v50 = vmul.f32 %v1625_v25, %v1843_v44 }
  0xae   : > { %3229 = vst [vmem:[#allocation38_spill] sm:$0xff] %v1852_v63  ;;  %3230 = vst [vmem:[#allocation39_spill] sm:$0xff] %v1855_v0  ;;  %v776_v38 = vmul.f32 0.15915494, %v1855_v0  ;;  %v777_v60 = vmul.f32 0.15915494, %v1858_v61 }
  0xaf   : > { %3231 = vst [vmem:[#allocation40_spill] sm:$0xff] %v1858_v61  ;;  %3232 = vst [vmem:[#allocation41_spill] sm:$0xff] %v1861_v10  ;;  %v778_v6 = vmul.f32 0.15915494, %v1861_v10  ;;  %v779_v37 = vmul.f32 0.15915494, %v1864_v39 }
  0xb0   : > { %v796_v45 = vadd.f32 0.5, %v772_v16  ;;  %v797_v5 = vadd.f32 0.5, %v773_v15  ;;  %v798_v36 = vadd.f32 0.5, %v774_v55  ;;  %v1882_v51 = vadd.f32 0.5, %v775_v7 }
  0xb1   : > { %v1884_v4 = vadd.f32 0.5, %v776_v38  ;;  %v1886_v35 = vadd.f32 0.5, %v777_v60  ;;  %v1888_v20 = vadd.f32 0.5, %v778_v6  ;;  %v1890_v2 = vadd.f32 0.5, %v779_v37 }
  0xb2   : > { %v820_v34 = vfloor.f32 %v796_v45  ;;  %v821_v19 = vfloor.f32 %v797_v5  ;;  %v822_v1 = vfloor.f32 %v798_v36  ;;  %v3132_v33 = vfloor.f32 %v1882_v51 }
  0xb3   : > { %v3133_v18 = vfloor.f32 %v1884_v4  ;;  %v3235_v37 = vfloor.f32 %v1760_v57  ;;  %v3239_v38 = vfloor.f32 %v1762_v58  ;;  %v3240_v57 = vfloor.f32 %v1764_v59 }
  0xb4   : > { %v1897_v55 = vmul.f32 6.28125, %v820_v34  ;;  %v1899_v60 = vmul.f32 6.28125, %v821_v19  ;;  %v1905_v5 = vmul.f32 6.28125, %v822_v1  ;;  %v1909_v36 = vmul.f32 6.28125, %v3132_v33 }
  0xb5   : > { %v1903_v6 = vmul.f32 0.0019353072, %v3235_v37  ;;  %v1913_v45 = vmul.f32 6.28125, %v3133_v18  ;;  %v1919_v7 = vmul.f32 0.0019353072, %v3239_v38  ;;  %v3241_v16 = vfloor.f32 %v1766_v3 }
  0xb6   : > { %3233 = vst [vmem:[#allocation42_spill] sm:$0xff] %v1897_v55  ;;  %3234 = vst [vmem:[#allocation43_spill] sm:$0xff] %v1899_v60  ;;  %v1923_v37 = vmul.f32 0.0019353072, %v3240_v57  ;;  %v3243_v18 = vfloor.f32 %v1768_v46  ;;  %v3245_v15 = vfloor.f32 %v1770_v42  ;;  %v3247_v38 = vfloor.f32 %v1886_v35 }
  0xb7   : > { %3236 = vst [vmem:[#allocation44_spill] sm:$0xff] %v1905_v5  ;;  %3237 = vst [vmem:[#allocation45_spill] sm:$0xff] %v1909_v36  ;;  %v1927_v14 = vmul.f32 0.0019353072, %v3241_v16  ;;  %v3249_v57 = vfloor.f32 %v1888_v20  ;;  %v3251_v16 = vfloor.f32 %v1890_v2  ;;  %v1967_v33 = vmul.f32 0.0019353072, %v821_v19 }
  0xb8   : > { %3238 = vst [vmem:[#allocation46_spill] sm:$0xff] %v1913_v45  ;;  %v1933_v23 = vmul.f32 0.0019353072, %v3243_v18  ;;  %v1937_v58 = vmul.f32 0.0019353072, %v3245_v15  ;;  %v1941_v59 = vmul.f32 6.28125, %v3247_v38  ;;  %v1973_v42 = vmul.f32 %v1629_v27, %v1843_v44 }
  0xb9   : > { %3242 = vst [vmem:[#allocation47_spill] sm:$0xff] %v1927_v14  ;;  %v1945_v3 = vmul.f32 6.28125, %v3249_v57  ;;  %v1949_v62 = vmul.f32 6.28125, %v3251_v16  ;;  %v1963_v57 = vmul.f32 %v1627_v26, %v1843_v44  ;;  %v1965_v16 = vmul.f32 0.0019353072, %v820_v34  ;;  %3254 = vst [vmem:[#allocation54_spill] sm:$0xff] %v1967_v33 }
  0xba   : > { %3244 = vst [vmem:[#allocation48_spill] sm:$0xff] %v1933_v23  ;;  %3246 = vst [vmem:[#allocation49_spill] sm:$0xff] %v1937_v58  ;;  %v1969_v18 = vmul.f32 0.0019353072, %v822_v1  ;;  %v1977_v15 = vmul.f32 %v1631_v28, %v1843_v44  ;;  %v1981_v38 = vmul.f32 %v1633_v29, %v1843_v44  ;;  %v1985_v34 = vmul.f32 %v1635_v30, %v1843_v44 }
  0xbb   : > { %3248 = vst [vmem:[#allocation50_spill] sm:$0xff] %v1941_v59  ;;  %3250 = vst [vmem:[#allocation51_spill] sm:$0xff] %v1945_v3  ;;  %v1989_v1 = vmul.f32 %v1637_v31, %v1843_v44  ;;  %v246_v46 = vmul.f32 0.15915494, %v1871_v13  ;;  %v247_v45 = vmul.f32 0.15915494, %v1878_v50 }
  0xbc   : > { %3252 = vst [vmem:[#allocation52_spill] sm:$0xff] %v1949_v62  ;;  %3253 = vst [vmem:[#allocation53_spill] sm:$0xff] %v1965_v16  ;;  %v248_v0 = vmul.f32 0.15915494, %v1963_v57  ;;  %v249_v63 = vmul.f32 0.15915494, %v1973_v42 }
  0xbd   : > { %3255 = vst [vmem:[#allocation55_spill] sm:$0xff] %v1969_v18  ;;  %3256 = vst [vmem:[#allocation56_spill] sm:$0xff] %v1973_v42  ;;  %v250_v5 = vmul.f32 0.15915494, %v1977_v15  ;;  %v251_v40 = vmul.f32 0.15915494, %v1981_v38 }
  0xbe   : > { %3257 = vst [vmem:[#allocation57_spill] sm:$0xff] %v1977_v15  ;;  %3258 = vst [vmem:[#allocation58_spill] sm:$0xff] %v1981_v38  ;;  %v252_v44 = vmul.f32 0.15915494, %v1985_v34  ;;  %v253_v18 = vmul.f32 0.15915494, %v1989_v1 }
  0xbf   : > { %3259 = vst [vmem:[#allocation59_spill] sm:$0xff] %v1985_v34  ;;  %3260 = vst [vmem:[#allocation60_spill] sm:$0xff] %v1989_v1  ;;  %v270_v19 = vadd.f32 0.5, %v246_v46  ;;  %v271_v59 = vadd.f32 0.5, %v247_v45  ;;  %v272_v61 = vadd.f32 0.5, %v248_v0  ;;  %v273_v60 = vadd.f32 0.5, %v249_v63  ;;  %v746_v46 = vpop.permute.xlu1 %745 }
  0xc0   : > { %v274_v53 = vadd.f32 0.5, %v250_v5  ;;  %v275_v33 = vadd.f32 0.5, %v251_v40  ;;  %v276_v55 = vadd.f32 0.5, %v252_v44  ;;  %v277_v47 = vadd.f32 0.5, %v253_v18 }
  0xc1   : > { %v294_v16 = vfloor.f32 %v270_v19  ;;  %v295_v36 = vfloor.f32 %v271_v59  ;;  %v296_v3 = vfloor.f32 %v272_v61  ;;  %v297_v10 = vfloor.f32 %v273_v60 }
  0xc2   : > { %v298_v11 = vfloor.f32 %v274_v53  ;;  %v299_v41 = vfloor.f32 %v275_v33  ;;  %v300_v58 = vfloor.f32 %v276_v55  ;;  %v301_v32 = vfloor.f32 %v277_v47  ;;  %v741_v33 = vpop.permute.xlu0 %740 }
  0xc3   : > { %v2003_v23 = vmul.f32 6.28125, %v294_v16  ;;  %v2005_v14 = vmul.f32 6.28125, %v295_v36  ;;  %v3262_v0 = vfloor.f32 %v1882_v51  ;;  %v2011_v40 = vmul.f32 6.28125, %v296_v3 }
  0xc4   : > { %v2013_v5 = vmul.f32 6.28125, %v297_v10  ;;  %v2015_v45 = vmul.f32 6.28125, %v298_v11  ;;  %v3266_v47 = vfloor.f32 %v1884_v4  ;;  %v3267_v61 = vfloor.f32 %v1886_v35 }
  0xc5   : > { %3261 = vst [vmem:[#allocation61_spill] sm:$0xff] %v2003_v23  ;;  %v2009_v63 = vmul.f32 0.0019353072, %v3262_v0  ;;  %3263 = vst [vmem:[#allocation62_spill] sm:$0xff] %v2011_v40  ;;  %v2027_v51 = vmul.f32 6.28125, %v299_v41  ;;  %v3269_v60 = vfloor.f32 %v1888_v20  ;;  %v3270_v18 = vfloor.f32 %v1890_v2 }
  0xc6   : > { %3264 = vst [vmem:[#allocation63_spill] sm:$0xff] %v2013_v5  ;;  %3265 = vst [vmem:[#allocation64_spill] sm:$0xff] %v2015_v45  ;;  %v2021_v53 = vmul.f32 0.0019353072, %v3266_v47  ;;  %v2025_v55 = vmul.f32 0.0019353072, %v3267_v61  ;;  %v2038_v44 = vmul.f32 %v746_v46, %v1623_v24  ;;  %v2041_v4 = vmul.f32 %v746_v46, %v1625_v25 }
  0xc7   : > { %3268 = vst [vmem:[#allocation65_spill] sm:$0xff] %v2027_v51  ;;  %v2031_v59 = vmul.f32 0.0019353072, %v3269_v60  ;;  %v2035_v19 = vmul.f32 0.0019353072, %v3270_v18  ;;  %v2043_v0 = vmul.f32 6.28125, %v300_v58  ;;  %v2058_v18 = vmul.f32 %v746_v46, %v1627_v26 }
  0xc8   : > { %3271 = vst [vmem:[#allocation66_spill] sm:$0xff] %v2038_v44  ;;  %3272 = vst [vmem:[#allocation67_spill] sm:$0xff] %v2041_v4  ;;  %v2045_v35 = vmul.f32 6.28125, %v301_v32  ;;  %v2062_v47 = vmul.f32 0.0019353072, %v294_v16  ;;  %v2067_v20 = vmul.f32 %v746_v46, %v1629_v27  ;;  %v2070_v2 = vmul.f32 %v746_v46, %v1631_v28 }
  0xc9   : > { %3273 = vst [vmem:[#allocation68_spill] sm:$0xff] %v2043_v0  ;;  %3275 = vst [vmem:[#allocation70_spill] sm:$0xff] %v2058_v18  ;;  %v2064_v23 = vmul.f32 0.0019353072, %v295_v36  ;;  %v2073_v61 = vmul.f32 %v746_v46, %v1633_v29  ;;  %v2076_v60 = vmul.f32 %v746_v46, %v1635_v30  ;;  %v2079_v45 = vmul.f32 %v746_v46, %v1637_v31 }
  0xca   : > { %3274 = vst [vmem:[#allocation69_spill] sm:$0xff] %v2045_v35  ;;  %3276 = vst [vmem:[#allocation71_spill] sm:$0xff] %v2067_v20  ;;  %v788_v16 = vmul.f32 0.15915494, %v2038_v44  ;;  %v789_v36 = vmul.f32 0.15915494, %v2041_v4  ;;  %v2085_v51 = vmul.f32 %v741_v33, %v1623_v24  ;;  %v2091_v42 = vmul.f32 %v741_v33, %v1625_v25 }
  0xcb   : > { %3277 = vst [vmem:[#allocation72_spill] sm:$0xff] %v2070_v2  ;;  %3278 = vst [vmem:[#allocation73_spill] sm:$0xff] %v2073_v61  ;;  %v790_v62 = vmul.f32 0.15915494, %v2058_v18  ;;  %v791_v38 = vmul.f32 0.15915494, %v2067_v20 }
  0xcc   : > { %3279 = vst [vmem:[#allocation74_spill] sm:$0xff] %v2076_v60  ;;  %3280 = vst [vmem:[#allocation75_spill] sm:$0xff] %v2079_v45  ;;  %v792_v15 = vmul.f32 0.15915494, %v2070_v2  ;;  %v793_v5 = vmul.f32 0.15915494, %v2073_v61 }
  0xcd   : > { %3281 = vst [vmem:[#allocation76_spill] sm:$0xff] %v2085_v51  ;;  %3282 = vst [vmem:[#allocation77_spill] sm:$0xff] %v2091_v42  ;;  %v2095_v44 = vmul.f32 0.0019353072, %v296_v3  ;;  %v794_v4 = vmul.f32 0.15915494, %v2076_v60 }
  0xce   : > { %v795_v18 = vmul.f32 0.15915494, %v2079_v45  ;;  %v2101_v20 = vmul.f32 0.0019353072, %v297_v10  ;;  %v2103_v2 = vmul.f32 0.0019353072, %v298_v11 }
  0xcf   : > { %v2105_v61 = vmul.f32 0.0019353072, %v299_v41  ;;  %v2107_v25 = vmul.f32 0.0019353072, %v300_v58  ;;  %v2109_v40 = vmul.f32 0.0019353072, %v301_v32  ;;  %v2128_v58 = vmul.f32 %v741_v33, %v1627_v26 }
  0xd0   : > { %3283 = vst [vmem:[#allocation78_spill] sm:$0xff] %v2103_v2  ;;  %v2111_v46 = vadd.f32 0.5, %v788_v16  ;;  %v2113_v3 = vadd.f32 0.5, %v789_v36  ;;  %v2115_v0 = vadd.f32 0.5, %v790_v62  ;;  %v2117_v34 = vadd.f32 0.5, %v791_v38  ;;  %v3336_v2 = vld [vmem:[#allocation45_spill] sm:$0xff] }
  0xd1   : > { %3284 = vst [vmem:[#allocation79_spill] sm:$0xff] %v2105_v61  ;;  %3285 = vst [vmem:[#allocation80_spill] sm:$0xff] %v2107_v25  ;;  %v2119_v45 = vadd.f32 0.5, %v792_v15  ;;  %v2121_v10 = vadd.f32 0.5, %v793_v5  ;;  %v2123_v11 = vadd.f32 0.5, %v794_v4  ;;  %v2125_v41 = vadd.f32 0.5, %v795_v18 }
  0xd2   : > { %3286 = vst [vmem:[#allocation81_spill] sm:$0xff] %v2109_v40  ;;  %3287 = vst [vmem:[#allocation82_spill] sm:$0xff] %v2117_v34  ;;  %v2131_v32 = vmul.f32 %v741_v33, %v1629_v27  ;;  %v2134_v16 = vmul.f32 %v741_v33, %v1631_v28  ;;  %v2137_v62 = vmul.f32 %v741_v33, %v1633_v29  ;;  %v780_v26 = vmul.f32 0.15915494, %v2085_v51  ;;  %v3335_v61 = vld [vmem:[#allocation38_spill] sm:$0xff] }
  0xd3   : > { %3288 = vst [vmem:[#allocation83_spill] sm:$0xff] %v2119_v45  ;;  %3289 = vst [vmem:[#allocation84_spill] sm:$0xff] %v2121_v10  ;;  %v2140_v15 = vmul.f32 %v741_v33, %v1635_v30  ;;  %v2143_v38 = vmul.f32 %v741_v33, %v1637_v31  ;;  %v781_v4 = vmul.f32 0.15915494, %v2091_v42  ;;  %v782_v27 = vmul.f32 0.15915494, %v2128_v58 }
  0xd4   : > { %3290 = vst [vmem:[#allocation85_spill] sm:$0xff] %v2123_v11  ;;  %3291 = vst [vmem:[#allocation86_spill] sm:$0xff] %v2125_v41  ;;  %v783_v18 = vmul.f32 0.15915494, %v2131_v32  ;;  %v784_v29 = vmul.f32 0.15915494, %v2134_v16  ;;  %v3300_v31 = vsub.f32 %v1701_v8, %v1778_v48  ;;  %v3301_v5 = vsub.f32 %v1704_v9, %v1780_v49 }
  0xd5   : > { %3292 = vst [vmem:[#allocation87_spill] sm:$0xff] %v2128_v58  ;;  %3293 = vst [vmem:[#allocation88_spill] sm:$0xff] %v2131_v32  ;;  %v785_v30 = vmul.f32 0.15915494, %v2137_v62  ;;  %v786_v33 = vmul.f32 0.15915494, %v2140_v15  ;;  %v3308_v8 = vsub.f32 %v1725_v17, %v1786_v52  ;;  %v3309_v9 = vsub.f32 %v1734_v21, %v1790_v54 }
  0xd6   : > { %3294 = vst [vmem:[#allocation89_spill] sm:$0xff] %v2134_v16  ;;  %3295 = vst [vmem:[#allocation90_spill] sm:$0xff] %v2137_v62  ;;  %v787_v24 = vmul.f32 0.15915494, %v2143_v38  ;;  %v2161_v42 = vadd.f32 0.5, %v780_v26  ;;  %v2163_v16 = vadd.f32 0.5, %v781_v4  ;;  %v2169_v36 = vsub.f32 %v3300_v31, %v1847_v43 }
  0xd7   : > { %3296 = vst [vmem:[#allocation91_spill] sm:$0xff] %v2140_v15  ;;  %3297 = vst [vmem:[#allocation92_spill] sm:$0xff] %v2143_v38  ;;  %v2175_v38 = vsub.f32 %v3301_v5, %v1849_v56  ;;  %v2177_v58 = vadd.f32 0.5, %v782_v27  ;;  %v2179_v28 = vadd.f32 0.5, %v783_v18  ;;  %v2181_v26 = vadd.f32 0.5, %v784_v29  ;;  %v3312_v5 = vld [vmem:[#allocation24_spill] sm:$0xff] }
  0xd8   : > { %3298 = vst [vmem:[#allocation93_spill] sm:$0xff] %v2161_v42  ;;  %3299 = vst [vmem:[#allocation94_spill] sm:$0xff] %v2163_v16  ;;  %v2183_v4 = vadd.f32 0.5, %v785_v30  ;;  %v2185_v32 = vadd.f32 0.5, %v786_v33  ;;  %v2187_v15 = vadd.f32 0.5, %v787_v24  ;;  %v2193_v43 = vsub.f32 %v3308_v8, %v1903_v6  ;;  %v3311_v24 = vld [vmem:[#allocation47_spill] sm:$0xff] }
  0xd9   : > { %3302 = vst [vmem:[#allocation95_spill] sm:$0xff] %v2177_v58  ;;  %3303 = vst [vmem:[#allocation96_spill] sm:$0xff] %v2179_v28  ;;  %v2199_v48 = vsub.f32 %v3309_v9, %v1919_v7  ;;  %v3310_v49 = vsub.f32 %v1737_v22, %v1794_v12  ;;  %v3313_v27 = vld [vmem:[#allocation30_spill] sm:$0xff]  ;;  %v3315_v17 = vld [vmem:[#allocation48_spill] sm:$0xff]  ;;  %v2227_v12 = vmul.f32 %v2169_v36, %v2169_v36 }
  0xda   : > { %3304 = vst [vmem:[#allocation97_spill] sm:$0xff] %v2181_v26  ;;  %3305 = vst [vmem:[#allocation98_spill] sm:$0xff] %v2183_v4  ;;  %v3314_v18 = vsub.f32 %v3312_v5, %v3313_v27  ;;  %v3316_v52 = vld [vmem:[#allocation25_spill] sm:$0xff]  ;;  %v3317_v6 = vld [vmem:[#allocation35_spill] sm:$0xff]  ;;  %v2231_v22 = vmul.f32 %v2175_v38, %v2175_v38 }
  0xdb   : > { %3306 = vst [vmem:[#allocation99_spill] sm:$0xff] %v2185_v32  ;;  %3307 = vst [vmem:[#allocation100_spill] sm:$0xff] %v2187_v15  ;;  %v2205_v56 = vsub.f32 %v3310_v49, %v1923_v37  ;;  %v3318_v30 = vsub.f32 %v3316_v52, %v3317_v6  ;;  %v3319_v21 = vld [vmem:[#allocation49_spill] sm:$0xff]  ;;  %v3320_v54 = vld [vmem:[#allocation26_spill] sm:$0xff]  ;;  %v2235_v37 = vmul.f32 %v2193_v43, %v2193_v43 }
  0xdc   : > { %v2211_v29 = vsub.f32 %v3314_v18, %v3311_v24  ;;  %v3321_v7 = vld [vmem:[#allocation36_spill] sm:$0xff]  ;;  %v2239_v9 = vmul.f32 %v2199_v48, %v2199_v48  ;;  %v430_v18 = vmul.f32 -2.3868347e-08, %v2227_v12  ;;  %v3323_v6 = vld [vmem:[#allocation53_spill] sm:$0xff]  ;;  %v3327_v15 = vld [vmem:[#allocation54_spill] sm:$0xff] }
  0xdd   : > { %v2217_v31 = vsub.f32 %v3318_v30, %v3315_v17  ;;  %v3322_v33 = vsub.f32 %v3320_v54, %v3321_v7  ;;  %v2243_v49 = vmul.f32 %v2205_v56, %v2205_v56  ;;  %v431_v17 = vmul.f32 -2.3868347e-08, %v2231_v22  ;;  %v3324_v30 = vld [vmem:[#allocation33_spill] sm:$0xff]  ;;  %v3328_v32 = vld [vmem:[#allocation34_spill] sm:$0xff]  ;;  %v3329_v4 = vld [vmem:[#allocation43_spill] sm:$0xff] }
  0xde   : > { %v2247_v24 = vmul.f32 %v2211_v29, %v2211_v29  ;;  %v432_v52 = vmul.f32 -2.3868347e-08, %v2235_v37  ;;  %v3330_v26 = vsub.f32 %v3328_v32, %v3329_v4  ;;  %v454_v42 = vadd.f32 2.752397e-06, %v430_v18 }
  0xdf   : > { %v2223_v8 = vsub.f32 %v3322_v33, %v3319_v21  ;;  %v2251_v5 = vmul.f32 %v2217_v31, %v2217_v31  ;;  %v3325_v21 = vld [vmem:[#allocation42_spill] sm:$0xff]  ;;  %v433_v33 = vmul.f32 -2.3868347e-08, %v2239_v9  ;;  %v434_v62 = vmul.f32 -2.3868347e-08, %v2243_v49 }
  0xe0   : > { %v3326_v54 = vsub.f32 %v3324_v30, %v3325_v21  ;;  %v435_v51 = vmul.f32 -2.3868347e-08, %v2247_v24  ;;  %v2273_v28 = vsub.f32 %v3330_v26, %v3327_v15  ;;  %v3331_v30 = vld [vmem:[#allocation55_spill] sm:$0xff]  ;;  %v3333_v21 = vld [vmem:[#allocation44_spill] sm:$0xff]  ;;  %v455_v1 = vadd.f32 2.752397e-06, %v431_v17 }
  0xe1   : > { %v2255_v27 = vmul.f32 %v2223_v8, %v2223_v8  ;;  %v436_v58 = vmul.f32 -2.3868347e-08, %v2251_v5  ;;  %v456_v40 = vadd.f32 2.752397e-06, %v432_v52  ;;  %v457_v25 = vadd.f32 2.752397e-06, %v433_v33 }
  0xe2   : > { %v2264_v7 = vsub.f32 %v3326_v54, %v3323_v6  ;;  %v3332_v6 = vld [vmem:[#allocation37_spill] sm:$0xff]  ;;  %v3337_v32 = vsub.f32 %v3335_v61, %v3336_v2  ;;  %v458_v26 = vadd.f32 2.752397e-06, %v434_v62  ;;  %v459_v4 = vadd.f32 2.752397e-06, %v435_v51 }
  0xe3   : > { %v437_v16 = vmul.f32 -2.3868347e-08, %v2255_v27  ;;  %v3334_v54 = vsub.f32 %v3332_v6, %v3333_v21  ;;  %v460_v60 = vadd.f32 2.752397e-06, %v436_v58  ;;  %v478_v18 = vmul.f32 %v454_v42, %v2227_v12 }
  0xe4   : > { %v2287_v15 = vsub.f32 %v3337_v32, %v2009_v63  ;;  %v479_v11 = vmul.f32 %v455_v1, %v2231_v22  ;;  %v481_v17 = vmul.f32 %v457_v25, %v2239_v9  ;;  %v482_v52 = vmul.f32 %v458_v26, %v2243_v49 }
  0xe5   : > { %v2281_v35 = vsub.f32 %v3334_v54, %v3331_v30  ;;  %v461_v41 = vadd.f32 2.752397e-06, %v437_v16  ;;  %v480_v30 = vmul.f32 %v456_v40, %v2235_v37  ;;  %v483_v33 = vmul.f32 %v459_v4, %v2247_v24 }
  0xe6   : > { %v484_v2 = vmul.f32 %v460_v60, %v2251_v5  ;;  %v502_v63 = vadd.f32 -0.00019840832, %v478_v18  ;;  %v503_v51 = vadd.f32 -0.00019840832, %v479_v11  ;;  %v505_v62 = vadd.f32 -0.00019840832, %v481_v17 }
  0xe7   : > { %v485_v61 = vmul.f32 %v461_v41, %v2255_v27  ;;  %v504_v58 = vadd.f32 -0.00019840832, %v480_v30  ;;  %v506_v42 = vadd.f32 -0.00019840832, %v482_v52  ;;  %v507_v16 = vadd.f32 -0.00019840832, %v483_v33 }
  0xe8   : > { %v508_v6 = vadd.f32 -0.00019840832, %v484_v2  ;;  %v526_v1 = vmul.f32 %v502_v63, %v2227_v12  ;;  %v527_v25 = vmul.f32 %v503_v51, %v2231_v22  ;;  %v529_v54 = vmul.f32 %v505_v62, %v2239_v9 }
  0xe9   : > { %v509_v40 = vadd.f32 -0.00019840832, %v485_v61  ;;  %v528_v21 = vmul.f32 %v504_v58, %v2235_v37  ;;  %v530_v60 = vmul.f32 %v506_v42, %v2243_v49  ;;  %v531_v32 = vmul.f32 %v507_v16, %v2247_v24 }
  0xea   : > { %v532_v11 = vmul.f32 %v508_v6, %v2251_v5  ;;  %v550_v41 = vadd.f32 0.008333331, %v526_v1  ;;  %v551_v4 = vadd.f32 0.008333331, %v527_v25  ;;  %v553_v30 = vadd.f32 0.008333331, %v529_v54 }
  0xeb   : > { %v533_v26 = vmul.f32 %v509_v40, %v2255_v27  ;;  %v552_v18 = vadd.f32 0.008333331, %v528_v21  ;;  %v554_v17 = vadd.f32 0.008333331, %v530_v60  ;;  %v555_v52 = vadd.f32 0.008333331, %v531_v32 }
  0xec   : > { %v556_v33 = vadd.f32 0.008333331, %v532_v11  ;;  %v574_v2 = vmul.f32 %v550_v41, %v2227_v12  ;;  %v575_v61 = vmul.f32 %v551_v4, %v2231_v22  ;;  %v577_v58 = vmul.f32 %v553_v30, %v2239_v9 }
  0xed   : > { %v557_v63 = vadd.f32 0.008333331, %v533_v26  ;;  %v576_v51 = vmul.f32 %v552_v18, %v2235_v37  ;;  %v578_v62 = vmul.f32 %v554_v17, %v2243_v49  ;;  %v579_v42 = vmul.f32 %v555_v52, %v2247_v24 }
  0xee   : > { %v580_v16 = vmul.f32 %v556_v33, %v2251_v5  ;;  %v598_v6 = vadd.f32 -0.16666667, %v574_v2  ;;  %v599_v40 = vadd.f32 -0.16666667, %v575_v61  ;;  %v601_v21 = vadd.f32 -0.16666667, %v577_v58 }
  0xef   : > { %v581_v1 = vmul.f32 %v557_v63, %v2255_v27  ;;  %v600_v25 = vadd.f32 -0.16666667, %v576_v51  ;;  %v602_v54 = vadd.f32 -0.16666667, %v578_v62  ;;  %v603_v60 = vadd.f32 -0.16666667, %v579_v42 }
  0xf0   : > { %v604_v32 = vadd.f32 -0.16666667, %v580_v16  ;;  %v622_v11 = vmul.f32 %v598_v6, %v2227_v12  ;;  %v623_v26 = vmul.f32 %v599_v40, %v2231_v22  ;;  %v625_v18 = vmul.f32 %v601_v21, %v2239_v9 }
  0xf1   : > { %v605_v41 = vadd.f32 -0.16666667, %v581_v1  ;;  %v624_v4 = vmul.f32 %v600_v25, %v2235_v37  ;;  %v626_v30 = vmul.f32 %v602_v54, %v2243_v49  ;;  %v627_v17 = vmul.f32 %v603_v60, %v2247_v24  ;;  %v697_v37 = vpop.permute.xlu0 %696  ;;  %v3342_v60 = vld [vmem:[#allocation50_spill] sm:$0xff] }
  0xf2   : > { %v628_v52 = vmul.f32 %v604_v32, %v2251_v5  ;;  %v646_v33 = vadd.f32 1.0, %v622_v11  ;;  %v647_v63 = vadd.f32 1.0, %v623_v26  ;;  %v649_v51 = vadd.f32 1.0, %v625_v18  ;;  %v3345_v26 = vld [vmem:[#allocation51_spill] sm:$0xff] }
  0xf3   : > { %v629_v2 = vmul.f32 %v605_v41, %v2255_v27  ;;  %v648_v61 = vadd.f32 1.0, %v624_v4  ;;  %v650_v12 = vadd.f32 1.0, %v626_v30  ;;  %v651_v58 = vadd.f32 1.0, %v627_v17  ;;  %v3344_v41 = vld [vmem:[#allocation41_spill] sm:$0xff]  ;;  %v3347_v30 = vld [vmem:[#allocation52_spill] sm:$0xff] }
  0xf4   : > { %v652_v62 = vadd.f32 1.0, %v628_v52  ;;  %v670_v22 = vmul.f32 %v646_v33, %v2169_v36  ;;  %v671_v9 = vmul.f32 %v647_v63, %v2175_v38  ;;  %v673_v24 = vmul.f32 %v649_v51, %v2199_v48 }
  0xf5   : > { %v653_v42 = vadd.f32 1.0, %v629_v2  ;;  %v672_v49 = vmul.f32 %v648_v61, %v2193_v43  ;;  %v674_v5 = vmul.f32 %v650_v12, %v2205_v56  ;;  %v675_v27 = vmul.f32 %v651_v58, %v2211_v29  ;;  %v3338_v56 = vld [vmem:[#allocation39_spill] sm:$0xff]  ;;  %v3339_v29 = vld [vmem:[#allocation46_spill] sm:$0xff]  ;;  %v3349_v58 = vld [vmem:[#allocation21_spill] sm:$0xff] }
  0xf6   : > { %v676_v16 = vmul.f32 %v652_v62, %v2217_v31  ;;  %v2328_v6 = vmul.f32 %v697_v37, %v670_v22  ;;  %v2331_v40 = vmul.f32 %v697_v37, %v671_v9  ;;  %v2335_v25 = vmul.f32 %v697_v37, %v673_v24  ;;  %v3350_v62 = vld [vmem:[#allocation5_spill] sm:$0xff] }
  0xf7   : > { %v677_v1 = vmul.f32 %v653_v42, %v2223_v8  ;;  %v2333_v36 = vmul.f32 %v697_v37, %v672_v49  ;;  %v2337_v38 = vmul.f32 %v697_v37, %v674_v5  ;;  %v2339_v43 = vmul.f32 %v697_v37, %v675_v27  ;;  %v3341_v8 = vld [vmem:[#allocation40_spill] sm:$0xff]  ;;  %v3351_v22 = vld [vmem:[#allocation13_spill] sm:$0xff]  ;;  %v3353_v5 = vld [vmem:[#allocation22_spill] sm:$0xff] }
  0xf8   : > { %v2341_v48 = vmul.f32 %v697_v37, %v676_v16  ;;  %v3340_v31 = vsub.f32 %v3338_v56, %v3339_v29  ;;  %v3343_v32 = vsub.f32 %v3341_v8, %v3342_v60  ;;  %v3346_v4 = vsub.f32 %v3344_v41, %v3345_v26  ;;  %v3354_v27 = vld [vmem:[#allocation6_spill] sm:$0xff]  ;;  %v3357_v60 = vld [vmem:[#allocation23_spill] sm:$0xff] }
  0xf9   : > { %v2349_v54 = vmul.f32 %v697_v37, %v677_v1  ;;  %v3348_v17 = vsub.f32 %v1864_v39, %v3347_v30  ;;  %v2371_v52 = vmul.f32 %v2264_v7, %v2264_v7  ;;  %v2379_v33 = vmul.f32 %v2281_v35, %v2281_v35  ;;  %v3355_v16 = vld [vmem:[#allocation14_spill] sm:$0xff]  ;;  %v3359_v41 = vld [vmem:[#allocation15_spill] sm:$0xff] }
  0xfa   : > { %v2347_v21 = vsub.f32 %v3340_v31, %v2021_v53  ;;  %v2355_v11 = vsub.f32 %v3343_v32, %v2025_v55  ;;  %v2361_v18 = vsub.f32 %v3346_v4, %v2031_v59  ;;  %v2375_v55 = vmul.f32 %v2273_v28, %v2273_v28  ;;  %v3358_v32 = vld [vmem:[#allocation7_spill] sm:$0xff] }
  0xfb   : > { %v2367_v53 = vsub.f32 %v3348_v17, %v2035_v19  ;;  %v2383_v59 = vmul.f32 %v2287_v15, %v2287_v15  ;;  %v964_v61 = vmul.f32 -2.3868347e-08, %v2371_v52  ;;  %v966_v12 = vmul.f32 -2.3868347e-08, %v2379_v33 }
  0xfc   : > { %v2387_v39 = vmul.f32 %v2347_v21, %v2347_v21  ;;  %v2391_v19 = vmul.f32 %v2355_v11, %v2355_v11  ;;  %v2395_v2 = vmul.f32 %v2361_v18, %v2361_v18  ;;  %v965_v51 = vmul.f32 -2.3868347e-08, %v2375_v55 }
  0xfd   : > { %v2399_v63 = vmul.f32 %v2367_v53, %v2367_v53  ;;  %v3352_v37 = vsub.f32 %v3350_v62, %v3351_v22  ;;  %v967_v9 = vmul.f32 -2.3868347e-08, %v2383_v59  ;;  %v3356_v1 = vsub.f32 %v3354_v27, %v3355_v16  ;;  %v3361_v62 = vld [vmem:[#allocation27_spill] sm:$0xff]  ;;  %v3362_v22 = vld [vmem:[#allocation8_spill] sm:$0xff] }
  0xfe   : > { %v968_v49 = vmul.f32 -2.3868347e-08, %v2387_v39  ;;  %v969_v24 = vmul.f32 -2.3868347e-08, %v2391_v19  ;;  %v970_v29 = vmul.f32 -2.3868347e-08, %v2395_v2  ;;  %v3360_v26 = vsub.f32 %v3358_v32, %v3359_v41 }
  0xff   : > { %v2408_v42 = vsub.f32 %v3352_v37, %v3349_v58  ;;  %v2417_v56 = vsub.f32 %v3356_v1, %v3353_v5  ;;  %v971_v31 = vmul.f32 -2.3868347e-08, %v2399_v63  ;;  %v988_v8 = vadd.f32 2.752397e-06, %v964_v61  ;;  %v3363_v37 = vld [vmem:[#allocation16_spill] sm:$0xff] }
 0x100   : > { %v2425_v4 = vsub.f32 %v3360_v26, %v3357_v60  ;;  %v989_v30 = vadd.f32 2.752397e-06, %v965_v51  ;;  %v990_v17 = vadd.f32 2.752397e-06, %v966_v12  ;;  %v991_v58 = vadd.f32 2.752397e-06, %v967_v9 }
 0x101   : > { %v3364_v27 = vsub.f32 %v3362_v22, %v3363_v37  ;;  %v992_v16 = vadd.f32 2.752397e-06, %v968_v49  ;;  %v993_v1 = vadd.f32 2.752397e-06, %v969_v24  ;;  %v994_v10 = vadd.f32 2.752397e-06, %v970_v29 }
 0x102   : > { %v1012_v61 = vmul.f32 %v988_v8, %v2371_v52  ;;  %v995_v45 = vadd.f32 2.752397e-06, %v971_v31  ;;  %v1013_v34 = vmul.f32 %v989_v30, %v2375_v55  ;;  %v1014_v60 = vmul.f32 %v990_v17, %v2379_v33 }
 0x103   : > { %v2431_v5 = vsub.f32 %v3364_v27, %v3361_v62  ;;  %v1015_v51 = vmul.f32 %v991_v58, %v2383_v59  ;;  %v1016_v12 = vmul.f32 %v992_v16, %v2387_v39  ;;  %v1017_v9 = vmul.f32 %v993_v1, %v2391_v19 }
 0x104   : > { %v1018_v32 = vmul.f32 %v994_v10, %v2395_v2  ;;  %v1036_v41 = vadd.f32 -0.00019840832, %v1012_v61  ;;  %v1019_v49 = vmul.f32 %v995_v45, %v2399_v63  ;;  %v1037_v24 = vadd.f32 -0.00019840832, %v1013_v34 }
 0x105   : > { %v1038_v29 = vadd.f32 -0.00019840832, %v1014_v60  ;;  %v1039_v26 = vadd.f32 -0.00019840832, %v1015_v51  ;;  %v1040_v8 = vadd.f32 -0.00019840832, %v1016_v12 }
 0x106   : > { %v1041_v31 = vadd.f32 -0.00019840832, %v1017_v9  ;;  %v1042_v62 = vadd.f32 -0.00019840832, %v1018_v32  ;;  %v1060_v30 = vmul.f32 %v1036_v41, %v2371_v52  ;;  %v1043_v17 = vadd.f32 -0.00019840832, %v1019_v49 }
 0x107   : > { %v1061_v58 = vmul.f32 %v1037_v24, %v2375_v55  ;;  %v1062_v22 = vmul.f32 %v1038_v29, %v2379_v33  ;;  %v1063_v37 = vmul.f32 %v1039_v26, %v2383_v59  ;;  %v1064_v10 = vmul.f32 %v1040_v8, %v2387_v39 }
 0x108   : > { %v1065_v45 = vmul.f32 %v1041_v31, %v2391_v19  ;;  %v1066_v34 = vmul.f32 %v1042_v62, %v2395_v2  ;;  %v1084_v27 = vadd.f32 0.008333331, %v1060_v30  ;;  %v1067_v16 = vmul.f32 %v1043_v17, %v2399_v63  ;;  %v2457_v30 = vpop.permute.xlu1 %701 }
 0x109   : > { %v1085_v1 = vadd.f32 0.008333331, %v1061_v58  ;;  %v1086_v61 = vadd.f32 0.008333331, %v1062_v22  ;;  %v1087_v60 = vadd.f32 0.008333331, %v1063_v37 }
 0x10a   : > { %v1088_v51 = vadd.f32 0.008333331, %v1064_v10  ;;  %v1089_v12 = vadd.f32 0.008333331, %v1065_v45  ;;  %v1090_v9 = vadd.f32 0.008333331, %v1066_v34  ;;  %v1108_v32 = vmul.f32 %v1084_v27, %v2371_v52 }
 0x10b   : > { %v1091_v41 = vadd.f32 0.008333331, %v1067_v16  ;;  %v1109_v49 = vmul.f32 %v1085_v1, %v2375_v55  ;;  %v1110_v24 = vmul.f32 %v1086_v61, %v2379_v33  ;;  %v1111_v29 = vmul.f32 %v1087_v60, %v2383_v59 }
 0x10c   : > { %v1112_v26 = vmul.f32 %v1088_v51, %v2387_v39  ;;  %v1113_v8 = vmul.f32 %v1089_v12, %v2391_v19  ;;  %v1114_v31 = vmul.f32 %v1090_v9, %v2395_v2  ;;  %v1132_v62 = vadd.f32 -0.16666667, %v1108_v32 }
 0x10d   : > { %v1115_v17 = vmul.f32 %v1091_v41, %v2399_v63  ;;  %v1133_v58 = vadd.f32 -0.16666667, %v1109_v49  ;;  %v1134_v22 = vadd.f32 -0.16666667, %v1110_v24  ;;  %v1135_v37 = vadd.f32 -0.16666667, %v1111_v29 }
 0x10e   : > { %v1136_v10 = vadd.f32 -0.16666667, %v1112_v26  ;;  %v1137_v45 = vadd.f32 -0.16666667, %v1113_v8  ;;  %v1138_v34 = vadd.f32 -0.16666667, %v1114_v31  ;;  %v1156_v27 = vmul.f32 %v1132_v62, %v2371_v52  ;;  %v1231_v26 = vpop.permute.xlu1 %1230 }
 0x10f   : > { %v1139_v16 = vadd.f32 -0.16666667, %v1115_v17  ;;  %v1157_v1 = vmul.f32 %v1133_v58, %v2375_v55  ;;  %v1158_v61 = vmul.f32 %v1134_v22, %v2379_v33  ;;  %v1159_v60 = vmul.f32 %v1135_v37, %v2383_v59 }
 0x110   : > { %v1160_v51 = vmul.f32 %v1136_v10, %v2387_v39  ;;  %v1161_v12 = vmul.f32 %v1137_v45, %v2391_v19  ;;  %v1162_v9 = vmul.f32 %v1138_v34, %v2395_v2  ;;  %v1180_v32 = vadd.f32 1.0, %v1156_v27 }
 0x111   : > { %v1163_v41 = vmul.f32 %v1139_v16, %v2399_v63  ;;  %v1181_v52 = vadd.f32 1.0, %v1157_v1  ;;  %v1182_v49 = vadd.f32 1.0, %v1158_v61  ;;  %v1183_v24 = vadd.f32 1.0, %v1159_v60  ;;  %v3370_v16 = vld [vmem:[#allocation10_spill] sm:$0xff] }
 0x112   : > { %v1184_v55 = vadd.f32 1.0, %v1160_v51  ;;  %v1185_v29 = vadd.f32 1.0, %v1161_v12  ;;  %v1186_v33 = vadd.f32 1.0, %v1162_v9  ;;  %v1204_v59 = vmul.f32 %v1180_v32, %v2264_v7  ;;  %v3371_v1 = vld [vmem:[#allocation18_spill] sm:$0xff]  ;;  %v3373_v51 = vld [vmem:[#allocation31_spill] sm:$0xff] }
 0x113   : > { %v1187_v39 = vadd.f32 1.0, %v1163_v41  ;;  %v1205_v19 = vmul.f32 %v1181_v52, %v2273_v28  ;;  %v1206_v2 = vmul.f32 %v1182_v49, %v2281_v35  ;;  %v1207_v8 = vmul.f32 %v1183_v24, %v2287_v15  ;;  %v3374_v12 = vld [vmem:[#allocation11_spill] sm:$0xff]  ;;  %v3377_v52 = vld [vmem:[#allocation32_spill] sm:$0xff] }
 0x114   : > { %v1208_v31 = vmul.f32 %v1184_v55, %v2347_v21  ;;  %v1209_v63 = vmul.f32 %v1185_v29, %v2355_v11  ;;  %v1210_v62 = vmul.f32 %v1186_v33, %v2361_v18  ;;  %v1243_v17 = vmul.f32 %v1231_v26, %v1204_v59  ;;  %v3375_v9 = vld [vmem:[#allocation19_spill] sm:$0xff]  ;;  %v3378_v49 = vld [vmem:[#allocation12_spill] sm:$0xff] }
 0x115   : > { %v1211_v58 = vmul.f32 %v1187_v39, %v2367_v53  ;;  %v1244_v22 = vmul.f32 %v1231_v26, %v1205_v19  ;;  %v1245_v7 = vmul.f32 %v1231_v26, %v1206_v2  ;;  %v1246_v37 = vmul.f32 %v1231_v26, %v1207_v8  ;;  %v3379_v24 = vld [vmem:[#allocation20_spill] sm:$0xff] }
 0x116   : > { %v1247_v10 = vmul.f32 %v1231_v26, %v1208_v31  ;;  %v1248_v45 = vmul.f32 %v1231_v26, %v1209_v63  ;;  %v1249_v28 = vmul.f32 %v1231_v26, %v1210_v62  ;;  %v1267_v35 = vadd.f32 %v1243_v17, %v2328_v6  ;;  %v3365_v6 = vld [vmem:[#allocation28_spill] sm:$0xff]  ;;  %v3381_v17 = vld [vmem:[#allocation61_spill] sm:$0xff] }
 0x117   : > { %v1250_v34 = vmul.f32 %v1231_v26, %v1211_v58  ;;  %v1268_v15 = vadd.f32 %v1244_v22, %v2331_v40  ;;  %v1269_v21 = vadd.f32 %v1245_v7, %v2333_v36  ;;  %v1270_v11 = vadd.f32 %v1246_v37, %v2335_v25  ;;  %v3366_v40 = vld [vmem:[#allocation9_spill] sm:$0xff] }
 0x118   : > { %v1271_v18 = vadd.f32 %v1247_v10, %v2337_v38  ;;  %v1272_v27 = vadd.f32 %v1248_v45, %v2339_v43  ;;  %v1273_v53 = vadd.f32 %v1249_v28, %v2341_v48  ;;  %1291 = vst [vmem:[%s2488_s4] sm:$0xff] %v1267_v35  ;;  %v3367_v36 = vld [vmem:[#allocation17_spill] sm:$0xff]  ;;  %v3372_v61 = vsub.f32 %v3370_v16, %v3371_v1 }
 0x119   : > { %v3368_v25 = vsub.f32 %v3366_v40, %v3367_v36  ;;  %v1274_v43 = vadd.f32 %v1250_v34, %v2349_v54  ;;  %1292 = vst [vmem:[%s2488_s4 + $0x8] sm:$0xff] %v1268_v15  ;;  %1293 = vst [vmem:[%s2488_s4 + $0x10] sm:$0xff] %v1269_v21  ;;  %v3369_v48 = vld [vmem:[#allocation29_spill] sm:$0xff]  ;;  %v3376_v32 = vsub.f32 %v3374_v12, %v3375_v9 }
 0x11a   : > { %1294 = vst [vmem:[%s2488_s4 + $0x18] sm:$0xff] %v1270_v11  ;;  %v2505_v60 = vsub.f32 %v3372_v61, %v3369_v48  ;;  %v3380_v55 = vsub.f32 %v3378_v49, %v3379_v24  ;;  %1295 = vst [vmem:[%s2488_s4 + $0x20] sm:$0xff] %v1271_v18  ;;  %v2524_v29 = vmul.f32 %v2408_v42, %v2408_v42 }
 0x11b   : > { %v2495_v38 = vsub.f32 %v3368_v25, %v3365_v6  ;;  %v2511_v41 = vsub.f32 %v3376_v32, %v3373_v51  ;;  %1296 = vst [vmem:[%s2488_s4 + $0x28] sm:$0xff] %v1272_v27  ;;  %1297 = vst [vmem:[%s2488_s4 + $0x30] sm:$0xff] %v1273_v53  ;;  %v2528_v33 = vmul.f32 %v2417_v56, %v2417_v56  ;;  %v3386_v53 = vld [vmem:[#allocation56_spill] sm:$0xff]  ;;  %v3387_v6 = vld [vmem:[#allocation63_spill] sm:$0xff] }
 0x11c   : > { %v2517_v54 = vsub.f32 %v3380_v55, %v3377_v52  ;;  %v2532_v59 = vmul.f32 %v2425_v4, %v2425_v4  ;;  %v2536_v26 = vmul.f32 %v2431_v5, %v2431_v5  ;;  %1298 = vst [vmem:[%s2488_s4 + $0x38] sm:$0xff] %v1274_v43  ;;  %v2545_v19 = vmul.f32 %v2505_v60, %v2505_v60 }
 0x11d   : > { %v2541_v39 = vmul.f32 %v2495_v38, %v2495_v38  ;;  %v2549_v2 = vmul.f32 %v2511_v41, %v2511_v41  ;;  %v446_v31 = vmul.f32 -2.3868347e-08, %v2524_v29  ;;  %v447_v63 = vmul.f32 -2.3868347e-08, %v2528_v33 }
 0x11e   : > { %v2553_v8 = vmul.f32 %v2517_v54, %v2517_v54  ;;  %v448_v62 = vmul.f32 -2.3868347e-08, %v2532_v59  ;;  %v3382_v58 = vsub.f32 %v1871_v13, %v3381_v17  ;;  %v449_v7 = vmul.f32 -2.3868347e-08, %v2536_v26  ;;  %v3384_v13 = vld [vmem:[#allocation62_spill] sm:$0xff] }
 0x11f   : > { %v450_v37 = vmul.f32 -2.3868347e-08, %v2541_v39  ;;  %v451_v10 = vmul.f32 -2.3868347e-08, %v2545_v19  ;;  %v3383_v45 = vsub.f32 %v1878_v50, %v2005_v14  ;;  %v452_v35 = vmul.f32 -2.3868347e-08, %v2549_v2 }
 0x120   : > { %v2562_v22 = vsub.f32 %v3382_v58, %v2062_v47  ;;  %v453_v34 = vmul.f32 -2.3868347e-08, %v2553_v8  ;;  %v470_v15 = vadd.f32 2.752397e-06, %v446_v31  ;;  %v3385_v47 = vsub.f32 %v1963_v57, %v3384_v13 }
 0x121   : > { %v2571_v28 = vsub.f32 %v3383_v45, %v2064_v23  ;;  %v471_v11 = vadd.f32 2.752397e-06, %v447_v63  ;;  %v472_v18 = vadd.f32 2.752397e-06, %v448_v62  ;;  %v473_v27 = vadd.f32 2.752397e-06, %v449_v7 }
 0x122   : > { %v2579_v21 = vsub.f32 %v3385_v47, %v2095_v44  ;;  %v3388_v14 = vsub.f32 %v3386_v53, %v3387_v6  ;;  %v474_v50 = vadd.f32 2.752397e-06, %v450_v37  ;;  %v475_v40 = vadd.f32 2.752397e-06, %v451_v10 }
 0x123   : > { %v476_v36 = vadd.f32 2.752397e-06, %v452_v35  ;;  %v494_v25 = vmul.f32 %v470_v15, %v2524_v29  ;;  %v477_v43 = vadd.f32 2.752397e-06, %v453_v34  ;;  %v495_v48 = vmul.f32 %v471_v11, %v2528_v33 }
 0x124   : > { %v2585_v23 = vsub.f32 %v3388_v14, %v2101_v20  ;;  %v496_v57 = vmul.f32 %v472_v18, %v2532_v59  ;;  %v497_v44 = vmul.f32 %v473_v27, %v2536_v26  ;;  %v498_v16 = vmul.f32 %v474_v50, %v2541_v39 }
 0x125   : > { %v499_v1 = vmul.f32 %v475_v40, %v2545_v19  ;;  %v500_v61 = vmul.f32 %v476_v36, %v2549_v2  ;;  %v518_v20 = vadd.f32 -0.00019840832, %v494_v25  ;;  %v501_v51 = vmul.f32 %v477_v43, %v2553_v8 }
 0x126   : > { %v519_v12 = vadd.f32 -0.00019840832, %v495_v48  ;;  %v520_v9 = vadd.f32 -0.00019840832, %v496_v57  ;;  %v521_v32 = vadd.f32 -0.00019840832, %v497_v44 }
 0x127   : > { %v522_v52 = vadd.f32 -0.00019840832, %v498_v16  ;;  %v523_v49 = vadd.f32 -0.00019840832, %v499_v1  ;;  %v524_v24 = vadd.f32 -0.00019840832, %v500_v61  ;;  %v542_v55 = vmul.f32 %v518_v20, %v2524_v29 }
 0x128   : > { %v525_v31 = vadd.f32 -0.00019840832, %v501_v51  ;;  %v543_v63 = vmul.f32 %v519_v12, %v2528_v33  ;;  %v544_v62 = vmul.f32 %v520_v9, %v2532_v59  ;;  %v545_v17 = vmul.f32 %v521_v32, %v2536_v26 }
 0x129   : > { %v546_v58 = vmul.f32 %v522_v52, %v2541_v39  ;;  %v547_v7 = vmul.f32 %v523_v49, %v2545_v19  ;;  %v548_v37 = vmul.f32 %v524_v24, %v2549_v2  ;;  %v566_v10 = vadd.f32 0.008333331, %v542_v55 }
 0x12a   : > { %v549_v45 = vmul.f32 %v525_v31, %v2553_v8  ;;  %v567_v35 = vadd.f32 0.008333331, %v543_v63  ;;  %v568_v34 = vadd.f32 0.008333331, %v544_v62  ;;  %v569_v15 = vadd.f32 0.008333331, %v545_v17 }
 0x12b   : > { %v570_v13 = vadd.f32 0.008333331, %v546_v58  ;;  %v571_v47 = vadd.f32 0.008333331, %v547_v7  ;;  %v572_v11 = vadd.f32 0.008333331, %v548_v37  ;;  %v590_v18 = vmul.f32 %v566_v10, %v2524_v29 }
 0x12c   : > { %v573_v27 = vadd.f32 0.008333331, %v549_v45  ;;  %v591_v53 = vmul.f32 %v567_v35, %v2528_v33  ;;  %v592_v6 = vmul.f32 %v568_v34, %v2532_v59  ;;  %v593_v14 = vmul.f32 %v569_v15, %v2536_v26 }
 0x12d   : > { %v594_v50 = vmul.f32 %v570_v13, %v2541_v39  ;;  %v595_v40 = vmul.f32 %v571_v47, %v2545_v19  ;;  %v596_v36 = vmul.f32 %v572_v11, %v2549_v2  ;;  %v614_v25 = vadd.f32 -0.16666667, %v590_v18  ;;  %v3392_v18 = vld [vmem:[#allocation82_spill] sm:$0xff] }
 0x12e   : > { %v597_v43 = vmul.f32 %v573_v27, %v2553_v8  ;;  %v615_v48 = vadd.f32 -0.16666667, %v591_v53  ;;  %v616_v57 = vadd.f32 -0.16666667, %v592_v6  ;;  %v617_v44 = vadd.f32 -0.16666667, %v593_v14 }
 0x12f   : > { %v618_v16 = vadd.f32 -0.16666667, %v594_v50  ;;  %v619_v1 = vadd.f32 -0.16666667, %v595_v40  ;;  %v620_v61 = vadd.f32 -0.16666667, %v596_v36  ;;  %v638_v20 = vmul.f32 %v614_v25, %v2524_v29 }
 0x130   : > { %v621_v51 = vadd.f32 -0.16666667, %v597_v43  ;;  %v639_v12 = vmul.f32 %v615_v48, %v2528_v33  ;;  %v640_v9 = vmul.f32 %v616_v57, %v2532_v59  ;;  %v641_v32 = vmul.f32 %v617_v44, %v2536_v26  ;;  %v707_v59 = vpop.permute.xlu0 %706  ;;  %v3394_v6 = vld [vmem:[#allocation83_spill] sm:$0xff]  ;;  %v3396_v40 = vld [vmem:[#allocation84_spill] sm:$0xff]  ;;  %v3398_v43 = vld [vmem:[#allocation85_spill] sm:$0xff] }
 0x131   : > { %v642_v52 = vmul.f32 %v618_v16, %v2541_v39  ;;  %v643_v49 = vmul.f32 %v619_v1, %v2545_v19  ;;  %v644_v24 = vmul.f32 %v620_v61, %v2549_v2  ;;  %v662_v55 = vadd.f32 1.0, %v638_v20  ;;  %v3400_v44 = vld [vmem:[#allocation86_spill] sm:$0xff] }
 0x132   : > { %v645_v31 = vmul.f32 %v621_v51, %v2553_v8  ;;  %v663_v63 = vadd.f32 1.0, %v639_v12  ;;  %v664_v62 = vadd.f32 1.0, %v640_v9  ;;  %v665_v17 = vadd.f32 1.0, %v641_v32  ;;  %v3402_v61 = vld [vmem:[#allocation66_spill] sm:$0xff]  ;;  %v3403_v51 = vld [vmem:[#allocation67_spill] sm:$0xff] }
 0x133   : > { %v666_v29 = vadd.f32 1.0, %v642_v52  ;;  %v667_v58 = vadd.f32 1.0, %v643_v49  ;;  %v668_v7 = vadd.f32 1.0, %v644_v24  ;;  %v686_v33 = vmul.f32 %v662_v55, %v2408_v42  ;;  %v3404_v9 = vld [vmem:[#allocation70_spill] sm:$0xff]  ;;  %v3405_v52 = vld [vmem:[#allocation71_spill] sm:$0xff]  ;;  %v3406_v24 = vld [vmem:[#allocation72_spill] sm:$0xff] }
 0x134   : > { %v669_v37 = vadd.f32 1.0, %v645_v31  ;;  %v687_v26 = vmul.f32 %v663_v63, %v2417_v56  ;;  %v688_v39 = vmul.f32 %v664_v62, %v2425_v4  ;;  %v689_v19 = vmul.f32 %v665_v17, %v2431_v5  ;;  %v3407_v31 = vld [vmem:[#allocation73_spill] sm:$0xff]  ;;  %v3408_v62 = vld [vmem:[#allocation74_spill] sm:$0xff] }
 0x135   : > { %v690_v2 = vmul.f32 %v666_v29, %v2495_v38  ;;  %v691_v8 = vmul.f32 %v667_v58, %v2505_v60  ;;  %v692_v10 = vmul.f32 %v668_v7, %v2511_v41  ;;  %v2626_v45 = vmul.f32 %v707_v59, %v686_v33  ;;  %v3409_v29 = vld [vmem:[#allocation75_spill] sm:$0xff] }
 0x136   : > { %v693_v35 = vmul.f32 %v669_v37, %v2517_v54  ;;  %v2629_v34 = vmul.f32 %v707_v59, %v687_v26  ;;  %v2631_v42 = vmul.f32 %v707_v59, %v688_v39  ;;  %v2633_v15 = vmul.f32 %v707_v59, %v689_v19  ;;  %v3413_v19 = vld [vmem:[#allocation78_spill] sm:$0xff] }
 0x137   : > { %v2635_v56 = vmul.f32 %v707_v59, %v690_v2  ;;  %v2637_v4 = vmul.f32 %v707_v59, %v691_v8  ;;  %v2639_v5 = vmul.f32 %v707_v59, %v692_v10  ;;  %v3389_v38 = vfloor.f32 %v2111_v46  ;;  %v3414_v2 = vld [vmem:[#allocation57_spill] sm:$0xff]  ;;  %v3415_v8 = vld [vmem:[#allocation64_spill] sm:$0xff] }
 0x138   : > { %v2643_v41 = vmul.f32 %v707_v59, %v693_v35  ;;  %v3390_v13 = vfloor.f32 %v2113_v3  ;;  %v3391_v47 = vfloor.f32 %v2115_v0  ;;  %v3393_v27 = vfloor.f32 %v3392_v18  ;;  %v3420_v3 = vld [vmem:[#allocation79_spill] sm:$0xff] }
 0x139   : > { %v860_v60 = vmul.f32 6.28125, %v3389_v38  ;;  %v3395_v14 = vfloor.f32 %v3394_v6  ;;  %v3397_v36 = vfloor.f32 %v3396_v40  ;;  %v3399_v48 = vfloor.f32 %v3398_v43 }
 0x13a   : > { %v861_v54 = vmul.f32 6.28125, %v3390_v13  ;;  %v862_v11 = vmul.f32 6.28125, %v3391_v47  ;;  %v863_v53 = vmul.f32 6.28125, %v3393_v27  ;;  %v3401_v16 = vfloor.f32 %v3400_v44 }
 0x13b   : > { %v864_v50 = vmul.f32 6.28125, %v3395_v14  ;;  %v865_v25 = vmul.f32 6.28125, %v3397_v36  ;;  %v866_v57 = vmul.f32 6.28125, %v3399_v48  ;;  %v884_v20 = vsub.f32 %v3402_v61, %v860_v60 }
 0x13c   : > { %v867_v1 = vmul.f32 6.28125, %v3401_v16  ;;  %v885_v12 = vsub.f32 %v3403_v51, %v861_v54  ;;  %v886_v32 = vsub.f32 %v3404_v9, %v862_v11  ;;  %v887_v49 = vsub.f32 %v3405_v52, %v863_v53  ;;  %v3421_v11 = vld [vmem:[#allocation58_spill] sm:$0xff] }
 0x13d   : > { %v888_v55 = vsub.f32 %v3406_v24, %v864_v50  ;;  %v889_v63 = vsub.f32 %v3407_v31, %v865_v25  ;;  %v890_v17 = vsub.f32 %v3408_v62, %v866_v57  ;;  %v3410_v7 = vmov %v3389_v38  ;;  %v3426_v62 = vld [vmem:[#allocation80_spill] sm:$0xff] }
 0x13e   : > { %v891_v58 = vsub.f32 %v3409_v29, %v867_v1  ;;  %v908_v33 = vmul.f32 0.0019353072, %v3410_v7  ;;  %v3411_v59 = vmov %v3390_v13  ;;  %v3412_v26 = vmov %v3391_v47  ;;  %v3428_v29 = vld [vmem:[#allocation68_spill] sm:$0xff] }
 0x13f   : > { %v909_v37 = vmul.f32 0.0019353072, %v3411_v59  ;;  %v910_v39 = vmul.f32 0.0019353072, %v3412_v26  ;;  %v3416_v10 = vsub.f32 %v3414_v2, %v3415_v8  ;;  %v3417_v38 = vmov %v3393_v27  ;;  %v3422_v27 = vld [vmem:[#allocation65_spill] sm:$0xff] }
 0x140   : > { %v911_v60 = vmul.f32 0.0019353072, %v3417_v38  ;;  %v3418_v13 = vmov %v3395_v14  ;;  %v3419_v46 = vmov %v3397_v36  ;;  %v3423_v0 = vsub.f32 %v3421_v11, %v3422_v27  ;;  %v3430_v26 = vld [vmem:[#allocation81_spill] sm:$0xff] }
 0x141   : > { %v2677_v35 = vsub.f32 %v3416_v10, %v3413_v19  ;;  %v912_v54 = vmul.f32 0.0019353072, %v3418_v13  ;;  %v913_v47 = vmul.f32 0.0019353072, %v3419_v46  ;;  %v3424_v14 = vmov %v3399_v48  ;;  %v3432_v19 = vld [vmem:[#allocation69_spill] sm:$0xff] }
 0x142   : > { %v2689_v53 = vsub.f32 %v3423_v0, %v3420_v3  ;;  %v914_v50 = vmul.f32 0.0019353072, %v3424_v14  ;;  %v3425_v36 = vmov %v3401_v16  ;;  %v2695_v18 = vsub.f32 %v884_v20, %v908_v33 }
 0x143   : > { %v915_v25 = vmul.f32 0.0019353072, %v3425_v36  ;;  %v2697_v48 = vsub.f32 %v885_v12, %v909_v37  ;;  %v2699_v6 = vsub.f32 %v886_v32, %v910_v39  ;;  %v2701_v40 = vsub.f32 %v887_v49, %v911_v60  ;;  %v3431_v39 = vld [vmem:[#allocation60_spill] sm:$0xff] }
 0x144   : > { %v2703_v57 = vsub.f32 %v888_v55, %v912_v54  ;;  %v2705_v16 = vsub.f32 %v889_v63, %v913_v47  ;;  %v2707_v1 = vsub.f32 %v890_v17, %v914_v50  ;;  %v2713_v43 = vmul.f32 %v2695_v18, %v2695_v18  ;;  %v3427_v17 = vld [vmem:[#allocation59_spill] sm:$0xff] }
 0x145   : > { %v2709_v61 = vsub.f32 %v891_v58, %v915_v25  ;;  %v2717_v44 = vmul.f32 %v2697_v48, %v2697_v48  ;;  %v2721_v20 = vmul.f32 %v2699_v6, %v2699_v6  ;;  %v2725_v51 = vmul.f32 %v2701_v40, %v2701_v40 }
 0x146   : > { %v2729_v12 = vmul.f32 %v2703_v57, %v2703_v57  ;;  %v2733_v9 = vmul.f32 %v2705_v16, %v2705_v16  ;;  %v2737_v32 = vmul.f32 %v2707_v1, %v2707_v1  ;;  %v980_v49 = vmul.f32 -2.3868347e-08, %v2713_v43 }
 0x147   : > { %v2741_v52 = vmul.f32 %v2709_v61, %v2709_v61  ;;  %v981_v24 = vmul.f32 -2.3868347e-08, %v2717_v44  ;;  %v982_v55 = vmul.f32 -2.3868347e-08, %v2721_v20  ;;  %v983_v31 = vmul.f32 -2.3868347e-08, %v2725_v51 }
 0x148   : > { %v984_v63 = vmul.f32 -2.3868347e-08, %v2729_v12  ;;  %v3429_v58 = vsub.f32 %v3427_v17, %v3428_v29  ;;  %v985_v33 = vmul.f32 -2.3868347e-08, %v2733_v9  ;;  %v986_v59 = vmul.f32 -2.3868347e-08, %v2737_v32 }
 0x149   : > { %v987_v37 = vmul.f32 -2.3868347e-08, %v2741_v52  ;;  %v3433_v2 = vsub.f32 %v3431_v39, %v3432_v19  ;;  %v1004_v10 = vadd.f32 2.752397e-06, %v980_v49  ;;  %v1005_v38 = vadd.f32 2.752397e-06, %v981_v24 }
 0x14a   : > { %v2752_v7 = vsub.f32 %v3429_v58, %v3426_v62  ;;  %v1006_v60 = vadd.f32 2.752397e-06, %v982_v55  ;;  %v2765_v13 = vmul.f32 %v2562_v22, %v2562_v22  ;;  %v1007_v54 = vadd.f32 2.752397e-06, %v983_v31 }
 0x14b   : > { %v2761_v8 = vsub.f32 %v3433_v2, %v3430_v26  ;;  %v1008_v46 = vadd.f32 2.752397e-06, %v984_v63  ;;  %v1009_v47 = vadd.f32 2.752397e-06, %v985_v33  ;;  %v2769_v3 = vmul.f32 %v2571_v28, %v2571_v28 }
 0x14c   : > { %v1010_v11 = vadd.f32 2.752397e-06, %v986_v59  ;;  %v1011_v27 = vadd.f32 2.752397e-06, %v987_v37  ;;  %v1028_v0 = vmul.f32 %v1004_v10, %v2713_v43  ;;  %v1029_v14 = vmul.f32 %v1005_v38, %v2717_v44 }
 0x14d   : > { %v1030_v50 = vmul.f32 %v1006_v60, %v2721_v20  ;;  %v1031_v36 = vmul.f32 %v1007_v54, %v2725_v51  ;;  %v1032_v25 = vmul.f32 %v1008_v46, %v2729_v12  ;;  %v1033_v49 = vmul.f32 %v1009_v47, %v2733_v9 }
 0x14e   : > { %v1034_v24 = vmul.f32 %v1010_v11, %v2737_v32  ;;  %v1035_v55 = vmul.f32 %v1011_v27, %v2741_v52  ;;  %v1052_v31 = vadd.f32 -0.00019840832, %v1028_v0  ;;  %v1053_v63 = vadd.f32 -0.00019840832, %v1029_v14 }
 0x14f   : > { %v1054_v62 = vadd.f32 -0.00019840832, %v1030_v50  ;;  %v1055_v17 = vadd.f32 -0.00019840832, %v1031_v36  ;;  %v1056_v29 = vadd.f32 -0.00019840832, %v1032_v25  ;;  %v2781_v58 = vmul.f32 %v2579_v21, %v2579_v21 }
 0x150   : > { %v1057_v33 = vadd.f32 -0.00019840832, %v1033_v49  ;;  %v1058_v59 = vadd.f32 -0.00019840832, %v1034_v24  ;;  %v1059_v37 = vadd.f32 -0.00019840832, %v1035_v55  ;;  %v1076_v26 = vmul.f32 %v1052_v31, %v2713_v43 }
 0x151   : > { %v1077_v39 = vmul.f32 %v1053_v63, %v2717_v44  ;;  %v1078_v19 = vmul.f32 %v1054_v62, %v2721_v20  ;;  %v1079_v2 = vmul.f32 %v1055_v17, %v2725_v51  ;;  %v1080_v10 = vmul.f32 %v1056_v29, %v2729_v12 }
 0x152   : > { %v1081_v38 = vmul.f32 %v1057_v33, %v2733_v9  ;;  %v1082_v60 = vmul.f32 %v1058_v59, %v2737_v32  ;;  %v1083_v54 = vmul.f32 %v1059_v37, %v2741_v52  ;;  %v1100_v46 = vadd.f32 0.008333331, %v1076_v26 }
 0x153   : > { %v1101_v47 = vadd.f32 0.008333331, %v1077_v39  ;;  %v1102_v11 = vadd.f32 0.008333331, %v1078_v19  ;;  %v1103_v27 = vadd.f32 0.008333331, %v1079_v2  ;;  %v2793_v0 = vmul.f32 %v2585_v23, %v2585_v23 }
 0x154   : > { %v1104_v14 = vadd.f32 0.008333331, %v1080_v10  ;;  %v1105_v50 = vadd.f32 0.008333331, %v1081_v38  ;;  %v1106_v36 = vadd.f32 0.008333331, %v1082_v60  ;;  %v1124_v25 = vmul.f32 %v1100_v46, %v2713_v43 }
 0x155   : > { %v1107_v49 = vadd.f32 0.008333331, %v1083_v54  ;;  %v1125_v24 = vmul.f32 %v1101_v47, %v2717_v44  ;;  %v1126_v55 = vmul.f32 %v1102_v11, %v2721_v20  ;;  %v1127_v31 = vmul.f32 %v1103_v27, %v2725_v51 }
 0x156   : > { %v1128_v63 = vmul.f32 %v1104_v14, %v2729_v12  ;;  %v1129_v62 = vmul.f32 %v1105_v50, %v2733_v9  ;;  %v1130_v17 = vmul.f32 %v1106_v36, %v2737_v32  ;;  %v1148_v29 = vadd.f32 -0.16666667, %v1124_v25 }
 0x157   : > { %v1131_v33 = vmul.f32 %v1107_v49, %v2741_v52  ;;  %v1149_v59 = vadd.f32 -0.16666667, %v1125_v24  ;;  %v1150_v37 = vadd.f32 -0.16666667, %v1126_v55  ;;  %v1151_v26 = vadd.f32 -0.16666667, %v1127_v31 }
 0x158   : > { %v1152_v39 = vadd.f32 -0.16666667, %v1128_v63  ;;  %v1153_v19 = vadd.f32 -0.16666667, %v1129_v62  ;;  %v1154_v2 = vadd.f32 -0.16666667, %v1130_v17  ;;  %v1172_v10 = vmul.f32 %v1148_v29, %v2713_v43 }
 0x159   : > { %v1155_v38 = vadd.f32 -0.16666667, %v1131_v33  ;;  %v1173_v60 = vmul.f32 %v1149_v59, %v2717_v44  ;;  %v1174_v54 = vmul.f32 %v1150_v37, %v2721_v20  ;;  %v1175_v46 = vmul.f32 %v1151_v26, %v2725_v51  ;;  %v1241_v20 = vpop.permute.xlu1 %1240 }
 0x15a   : > { %v1176_v47 = vmul.f32 %v1152_v39, %v2729_v12  ;;  %v1177_v11 = vmul.f32 %v1153_v19, %v2733_v9  ;;  %v1178_v27 = vmul.f32 %v1154_v2, %v2737_v32  ;;  %v1196_v14 = vadd.f32 1.0, %v1172_v10 }
 0x15b   : > { %v1179_v50 = vmul.f32 %v1155_v38, %v2741_v52  ;;  %v1197_v36 = vadd.f32 1.0, %v1173_v60  ;;  %v1198_v25 = vadd.f32 1.0, %v1174_v54  ;;  %v1199_v49 = vadd.f32 1.0, %v1175_v46 }
 0x15c   : > { %v1200_v43 = vadd.f32 1.0, %v1176_v47  ;;  %v1201_v24 = vadd.f32 1.0, %v1177_v11  ;;  %v1202_v55 = vadd.f32 1.0, %v1178_v27  ;;  %v1220_v44 = vmul.f32 %v1196_v14, %v2695_v18 }
 0x15d   : > { %v1203_v31 = vadd.f32 1.0, %v1179_v50  ;;  %v1221_v51 = vmul.f32 %v1197_v36, %v2697_v48  ;;  %v1222_v12 = vmul.f32 %v1198_v25, %v2699_v6  ;;  %v1223_v9 = vmul.f32 %v1199_v49, %v2701_v40 }
 0x15e   : > { %v1224_v32 = vmul.f32 %v1200_v43, %v2703_v57  ;;  %v1225_v52 = vmul.f32 %v1201_v24, %v2705_v16  ;;  %v1226_v63 = vmul.f32 %v1202_v55, %v2707_v1  ;;  %v1259_v62 = vmul.f32 %v1241_v20, %v1220_v44 }
 0x15f   : > { %v1227_v17 = vmul.f32 %v1203_v31, %v2709_v61  ;;  %v1260_v29 = vmul.f32 %v1241_v20, %v1221_v51  ;;  %v1261_v18 = vmul.f32 %v1241_v20, %v1222_v12  ;;  %v1262_v33 = vmul.f32 %v1241_v20, %v1223_v9 }
 0x160   : > { %v1263_v48 = vmul.f32 %v1241_v20, %v1224_v32  ;;  %v1264_v6 = vmul.f32 %v1241_v20, %v1225_v52  ;;  %v1265_v59 = vmul.f32 %v1241_v20, %v1226_v63  ;;  %v1283_v40 = vadd.f32 %v1259_v62, %v2626_v45 }
 0x161   : > { %v1266_v57 = vmul.f32 %v1241_v20, %v1227_v17  ;;  %v1284_v16 = vadd.f32 %v1260_v29, %v2629_v34  ;;  %v1285_v1 = vadd.f32 %v1261_v18, %v2631_v42  ;;  %v1286_v61 = vadd.f32 %v1262_v33, %v2633_v15 }
 0x162   : > { %v1287_v37 = vadd.f32 %v1263_v48, %v2635_v56  ;;  %v1288_v26 = vadd.f32 %v1264_v6, %v2637_v4  ;;  %v1289_v39 = vadd.f32 %v1265_v59, %v2639_v5  ;;  %1307 = vst [vmem:[%s2488_s4 + $0x80] sm:$0xff] %v1283_v40  ;;  %v2829_v45 = vmul.f32 %v2677_v35, %v2677_v35 }
 0x163   : > { %v1290_v34 = vadd.f32 %v1266_v57, %v2643_v41  ;;  %1308 = vst [vmem:[%s2488_s4 + $0x88] sm:$0xff] %v1284_v16  ;;  %1309 = vst [vmem:[%s2488_s4 + $0x90] sm:$0xff] %v1285_v1  ;;  %v2837_v42 = vmul.f32 %v2689_v53, %v2689_v53  ;;  %v2841_v15 = vmul.f32 %v2752_v7, %v2752_v7  ;;  %v438_v4 = vmul.f32 -2.3868347e-08, %v2765_v13 }
 0x164   : > { %1310 = vst [vmem:[%s2488_s4 + $0x98] sm:$0xff] %v1286_v61  ;;  %v2845_v56 = vmul.f32 %v2761_v8, %v2761_v8  ;;  %1311 = vst [vmem:[%s2488_s4 + $0xa0] sm:$0xff] %v1287_v37  ;;  %v439_v5 = vmul.f32 -2.3868347e-08, %v2769_v3  ;;  %v440_v41 = vmul.f32 -2.3868347e-08, %v2781_v58 }
 0x165   : > { %1312 = vst [vmem:[%s2488_s4 + $0xa8] sm:$0xff] %v1288_v26  ;;  %1313 = vst [vmem:[%s2488_s4 + $0xb0] sm:$0xff] %v1289_v39  ;;  %v441_v19 = vmul.f32 -2.3868347e-08, %v2793_v0  ;;  %v442_v2 = vmul.f32 -2.3868347e-08, %v2829_v45 }
 0x166   : > { %1314 = vst [vmem:[%s2488_s4 + $0xb8] sm:$0xff] %v1290_v34  ;;  %v443_v10 = vmul.f32 -2.3868347e-08, %v2837_v42  ;;  %v444_v38 = vmul.f32 -2.3868347e-08, %v2841_v15 }
 0x167   : > { %v445_v60 = vmul.f32 -2.3868347e-08, %v2845_v56  ;;  %v462_v54 = vadd.f32 2.752397e-06, %v438_v4  ;;  %v463_v46 = vadd.f32 2.752397e-06, %v439_v5 }
 0x168   : > { %v464_v47 = vadd.f32 2.752397e-06, %v440_v41  ;;  %v465_v11 = vadd.f32 2.752397e-06, %v441_v19  ;;  %v466_v27 = vadd.f32 2.752397e-06, %v442_v2 }
 0x169   : > { %v467_v14 = vadd.f32 2.752397e-06, %v443_v10  ;;  %v468_v50 = vadd.f32 2.752397e-06, %v444_v38  ;;  %v486_v36 = vmul.f32 %v462_v54, %v2765_v13  ;;  %v469_v25 = vadd.f32 2.752397e-06, %v445_v60 }
 0x16a   : > { %v487_v49 = vmul.f32 %v463_v46, %v2769_v3  ;;  %v488_v43 = vmul.f32 %v464_v47, %v2781_v58  ;;  %v489_v24 = vmul.f32 %v465_v11, %v2793_v0  ;;  %v490_v55 = vmul.f32 %v466_v27, %v2829_v45 }
 0x16b   : > { %v491_v44 = vmul.f32 %v467_v14, %v2837_v42  ;;  %v492_v20 = vmul.f32 %v468_v50, %v2841_v15  ;;  %v510_v31 = vadd.f32 -0.00019840832, %v486_v36  ;;  %v493_v51 = vmul.f32 %v469_v25, %v2845_v56 }
 0x16c   : > { %v511_v12 = vadd.f32 -0.00019840832, %v487_v49  ;;  %v512_v9 = vadd.f32 -0.00019840832, %v488_v43  ;;  %v513_v32 = vadd.f32 -0.00019840832, %v489_v24 }
 0x16d   : > { %v514_v52 = vadd.f32 -0.00019840832, %v490_v55  ;;  %v515_v63 = vadd.f32 -0.00019840832, %v491_v44  ;;  %v516_v62 = vadd.f32 -0.00019840832, %v492_v20  ;;  %v534_v17 = vmul.f32 %v510_v31, %v2765_v13 }
 0x16e   : > { %v517_v29 = vadd.f32 -0.00019840832, %v493_v51  ;;  %v535_v18 = vmul.f32 %v511_v12, %v2769_v3  ;;  %v536_v33 = vmul.f32 %v512_v9, %v2781_v58  ;;  %v537_v48 = vmul.f32 %v513_v32, %v2793_v0 }
 0x16f   : > { %v538_v6 = vmul.f32 %v514_v52, %v2829_v45  ;;  %v539_v59 = vmul.f32 %v515_v63, %v2837_v42  ;;  %v540_v40 = vmul.f32 %v516_v62, %v2841_v15  ;;  %v558_v57 = vadd.f32 0.008333331, %v534_v17 }
 0x170   : > { %v541_v16 = vmul.f32 %v517_v29, %v2845_v56  ;;  %v559_v1 = vadd.f32 0.008333331, %v535_v18  ;;  %v560_v61 = vadd.f32 0.008333331, %v536_v33  ;;  %v561_v37 = vadd.f32 0.008333331, %v537_v48 }
 0x171   : > { %v562_v26 = vadd.f32 0.008333331, %v538_v6  ;;  %v563_v39 = vadd.f32 0.008333331, %v539_v59  ;;  %v564_v34 = vadd.f32 0.008333331, %v540_v40  ;;  %v582_v4 = vmul.f32 %v558_v57, %v2765_v13 }
 0x172   : > { %v565_v5 = vadd.f32 0.008333331, %v541_v16  ;;  %v583_v41 = vmul.f32 %v559_v1, %v2769_v3  ;;  %v584_v19 = vmul.f32 %v560_v61, %v2781_v58  ;;  %v585_v2 = vmul.f32 %v561_v37, %v2793_v0  ;;  %v3439_v6 = vld [vmem:[#allocation98_spill] sm:$0xff]  ;;  %v3440_v59 = vld [vmem:[#allocation99_spill] sm:$0xff]  ;;  %v3441_v57 = vld [vmem:[#allocation100_spill] sm:$0xff] }
 0x173   : > { %v586_v10 = vmul.f32 %v562_v26, %v2829_v45  ;;  %v587_v38 = vmul.f32 %v563_v39, %v2837_v42  ;;  %v588_v60 = vmul.f32 %v564_v34, %v2841_v15  ;;  %v606_v54 = vadd.f32 -0.16666667, %v582_v4 }
 0x174   : > { %v589_v46 = vmul.f32 %v565_v5, %v2845_v56  ;;  %v607_v47 = vadd.f32 -0.16666667, %v583_v41  ;;  %v608_v11 = vadd.f32 -0.16666667, %v584_v19  ;;  %v609_v27 = vadd.f32 -0.16666667, %v585_v2 }
 0x175   : > { %v610_v14 = vadd.f32 -0.16666667, %v586_v10  ;;  %v611_v50 = vadd.f32 -0.16666667, %v587_v38  ;;  %v612_v36 = vadd.f32 -0.16666667, %v588_v60  ;;  %v630_v25 = vmul.f32 %v606_v54, %v2765_v13 }
 0x176   : > { %v613_v49 = vadd.f32 -0.16666667, %v589_v46  ;;  %v631_v43 = vmul.f32 %v607_v47, %v2769_v3  ;;  %v632_v24 = vmul.f32 %v608_v11, %v2781_v58  ;;  %v633_v55 = vmul.f32 %v609_v27, %v2793_v0  ;;  %v3434_v13 = vld [vmem:[#allocation93_spill] sm:$0xff]  ;;  %v3435_v58 = vld [vmem:[#allocation94_spill] sm:$0xff]  ;;  %v3436_v0 = vld [vmem:[#allocation95_spill] sm:$0xff] }
 0x177   : > { %v634_v44 = vmul.f32 %v610_v14, %v2829_v45  ;;  %v635_v20 = vmul.f32 %v611_v50, %v2837_v42  ;;  %v636_v31 = vmul.f32 %v612_v36, %v2841_v15  ;;  %v654_v51 = vadd.f32 1.0, %v630_v25  ;;  %v3437_v45 = vld [vmem:[#allocation96_spill] sm:$0xff]  ;;  %v3438_v15 = vld [vmem:[#allocation97_spill] sm:$0xff]  ;;  %v3447_v50 = vld [vmem:[#allocation90_spill] sm:$0xff] }
 0x178   : > { %v637_v12 = vmul.f32 %v613_v49, %v2845_v56  ;;  %v655_v9 = vadd.f32 1.0, %v631_v43  ;;  %v656_v32 = vadd.f32 1.0, %v632_v24  ;;  %v657_v52 = vadd.f32 1.0, %v633_v55  ;;  %v3445_v47 = vld [vmem:[#allocation88_spill] sm:$0xff]  ;;  %v3446_v27 = vld [vmem:[#allocation89_spill] sm:$0xff]  ;;  %v3448_v25 = vld [vmem:[#allocation91_spill] sm:$0xff] }
 0x179   : > { %v828_v63 = vfloor.f32 %v3434_v13  ;;  %v658_v62 = vadd.f32 1.0, %v634_v44  ;;  %v659_v3 = vadd.f32 1.0, %v635_v20  ;;  %v660_v17 = vadd.f32 1.0, %v636_v31  ;;  %v3449_v43 = vld [vmem:[#allocation92_spill] sm:$0xff] }
 0x17a   : > { %v829_v29 = vfloor.f32 %v3435_v58  ;;  %v830_v18 = vfloor.f32 %v3436_v0  ;;  %v831_v33 = vfloor.f32 %v3437_v45  ;;  %v678_v42 = vmul.f32 %v654_v51, %v2562_v22 }
 0x17b   : > { %v832_v48 = vfloor.f32 %v3438_v15  ;;  %v833_v56 = vfloor.f32 %v3439_v6  ;;  %v834_v40 = vfloor.f32 %v3440_v59  ;;  %v835_v16 = vfloor.f32 %v3441_v57 }
 0x17c   : > { %v661_v1 = vadd.f32 1.0, %v637_v12  ;;  %v679_v61 = vmul.f32 %v655_v9, %v2571_v28  ;;  %v680_v37 = vmul.f32 %v656_v32, %v2579_v21  ;;  %v681_v26 = vmul.f32 %v657_v52, %v2585_v23 }
 0x17d   : > { %v682_v39 = vmul.f32 %v658_v62, %v2677_v35  ;;  %v683_v34 = vmul.f32 %v659_v3, %v2689_v53  ;;  %v2906_v22 = vmul.f32 %v660_v17, %v2752_v7  ;;  %v852_v4 = vmul.f32 6.28125, %v828_v63  ;;  %v3442_v35 = vld [vmem:[#allocation76_spill] sm:$0xff]  ;;  %v3443_v53 = vld [vmem:[#allocation77_spill] sm:$0xff]  ;;  %v3444_v7 = vld [vmem:[#allocation87_spill] sm:$0xff] }
 0x17e   : > { %v2909_v5 = vmul.f32 %v2457_v30, %v678_v42  ;;  %v853_v41 = vmul.f32 6.28125, %v829_v29  ;;  %v854_v19 = vmul.f32 6.28125, %v830_v18  ;;  %v855_v2 = vmul.f32 6.28125, %v831_v33 }
 0x17f   : > { %v856_v10 = vmul.f32 6.28125, %v832_v48  ;;  %v857_v28 = vmul.f32 6.28125, %v833_v56  ;;  %v858_v38 = vmul.f32 6.28125, %v834_v40  ;;  %v859_v21 = vmul.f32 6.28125, %v835_v16 }
 0x180   : > { %v2912_v23 = vmul.f32 %v661_v1, %v2761_v8  ;;  %v876_v60 = vsub.f32 %v3442_v35, %v852_v4  ;;  %v877_v54 = vsub.f32 %v3443_v53, %v853_v41  ;;  %v878_v46 = vsub.f32 %v3444_v7, %v854_v19 }
 0x181   : > { %v879_v11 = vsub.f32 %v3445_v47, %v855_v2  ;;  %v880_v14 = vsub.f32 %v3446_v27, %v856_v10  ;;  %v881_v36 = vsub.f32 %v3447_v50, %v857_v28  ;;  %v882_v49 = vsub.f32 %v3448_v25, %v858_v38 }
 0x182   : > { %v883_v24 = vsub.f32 %v3449_v43, %v859_v21  ;;  %v900_v55 = vmul.f32 0.0019353072, %v828_v63  ;;  %v901_v44 = vmul.f32 0.0019353072, %v829_v29  ;;  %v902_v8 = vmul.f32 0.0019353072, %v830_v18 }
 0x183   : > { %v2923_v20 = vmul.f32 %v2457_v30, %v679_v61  ;;  %v903_v31 = vmul.f32 0.0019353072, %v831_v33  ;;  %v904_v51 = vmul.f32 0.0019353072, %v832_v48  ;;  %v905_v12 = vmul.f32 0.0019353072, %v833_v56 }
 0x184   : > { %v906_v9 = vmul.f32 0.0019353072, %v834_v40  ;;  %v907_v32 = vmul.f32 0.0019353072, %v835_v16  ;;  %v2925_v52 = vsub.f32 %v876_v60, %v900_v55  ;;  %v2927_v13 = vsub.f32 %v877_v54, %v901_v44 }
 0x185   : > { %v2929_v62 = vsub.f32 %v878_v46, %v902_v8  ;;  %v2931_v3 = vsub.f32 %v879_v11, %v903_v31  ;;  %v2933_v17 = vsub.f32 %v880_v14, %v904_v51  ;;  %v2935_v63 = vsub.f32 %v881_v36, %v905_v12 }
 0x186   : > { %v2937_v58 = vsub.f32 %v882_v49, %v906_v9  ;;  %v2939_v29 = vsub.f32 %v883_v24, %v907_v32  ;;  %v2943_v0 = vmul.f32 %v2925_v52, %v2925_v52  ;;  %v2947_v18 = vmul.f32 %v2927_v13, %v2927_v13 }
 0x187   : > { %v2951_v45 = vmul.f32 %v2929_v62, %v2929_v62  ;;  %v2955_v33 = vmul.f32 %v2931_v3, %v2931_v3  ;;  %v2959_v42 = vmul.f32 %v2933_v17, %v2933_v17  ;;  %v2963_v15 = vmul.f32 %v2935_v63, %v2935_v63 }
 0x188   : > { %v2967_v48 = vmul.f32 %v2937_v58, %v2937_v58  ;;  %v2971_v6 = vmul.f32 %v2939_v29, %v2939_v29  ;;  %v972_v56 = vmul.f32 -2.3868347e-08, %v2943_v0  ;;  %v973_v59 = vmul.f32 -2.3868347e-08, %v2947_v18 }
 0x189   : > { %v2976_v40 = vmul.f32 %v2457_v30, %v680_v37  ;;  %v974_v57 = vmul.f32 -2.3868347e-08, %v2951_v45  ;;  %v975_v16 = vmul.f32 -2.3868347e-08, %v2955_v33  ;;  %v976_v1 = vmul.f32 -2.3868347e-08, %v2959_v42 }
 0x18a   : > { %v2982_v61 = vmul.f32 %v2457_v30, %v681_v26  ;;  %v977_v4 = vmul.f32 -2.3868347e-08, %v2963_v15  ;;  %v978_v41 = vmul.f32 -2.3868347e-08, %v2967_v48  ;;  %v979_v19 = vmul.f32 -2.3868347e-08, %v2971_v6 }
 0x18b   : > { %v2988_v2 = vmul.f32 %v2457_v30, %v682_v39  ;;  %v996_v37 = vadd.f32 2.752397e-06, %v972_v56  ;;  %v997_v10 = vadd.f32 2.752397e-06, %v973_v59  ;;  %v998_v28 = vadd.f32 2.752397e-06, %v974_v57 }
 0x18c   : > { %v2991_v38 = vmul.f32 %v2457_v30, %v683_v34  ;;  %v999_v21 = vadd.f32 2.752397e-06, %v975_v16  ;;  %v1000_v35 = vadd.f32 2.752397e-06, %v976_v1  ;;  %v1001_v60 = vadd.f32 2.752397e-06, %v977_v4 }
 0x18d   : > { %v1002_v26 = vadd.f32 2.752397e-06, %v978_v41  ;;  %v1003_v53 = vadd.f32 2.752397e-06, %v979_v19  ;;  %v1020_v54 = vmul.f32 %v996_v37, %v2943_v0  ;;  %v1021_v7 = vmul.f32 %v997_v10, %v2947_v18 }
 0x18e   : > { %v1022_v46 = vmul.f32 %v998_v28, %v2951_v45  ;;  %v1023_v39 = vmul.f32 %v999_v21, %v2955_v33  ;;  %v1024_v47 = vmul.f32 %v1000_v35, %v2959_v42  ;;  %v1025_v11 = vmul.f32 %v1001_v60, %v2963_v15 }
 0x18f   : > { %v1026_v34 = vmul.f32 %v1002_v26, %v2967_v48  ;;  %v1027_v27 = vmul.f32 %v1003_v53, %v2971_v6  ;;  %v1044_v14 = vadd.f32 -0.00019840832, %v1020_v54  ;;  %v1045_v50 = vadd.f32 -0.00019840832, %v1021_v7 }
 0x190   : > { %v3003_v36 = vmul.f32 %v2457_v30, %v2906_v22  ;;  %v1046_v25 = vadd.f32 -0.00019840832, %v1022_v46  ;;  %v1047_v49 = vadd.f32 -0.00019840832, %v1023_v39  ;;  %v1048_v43 = vadd.f32 -0.00019840832, %v1024_v47 }
 0x191   : > { %v1049_v24 = vadd.f32 -0.00019840832, %v1025_v11  ;;  %v1050_v55 = vadd.f32 -0.00019840832, %v1026_v34  ;;  %v1051_v44 = vadd.f32 -0.00019840832, %v1027_v27  ;;  %v1068_v8 = vmul.f32 %v1044_v14, %v2943_v0 }
 0x192   : > { %v1069_v31 = vmul.f32 %v1045_v50, %v2947_v18  ;;  %v1070_v51 = vmul.f32 %v1046_v25, %v2951_v45  ;;  %v1071_v12 = vmul.f32 %v1047_v49, %v2955_v33  ;;  %v1072_v9 = vmul.f32 %v1048_v43, %v2959_v42 }
 0x193   : > { %v1073_v32 = vmul.f32 %v1049_v24, %v2963_v15  ;;  %v1074_v22 = vmul.f32 %v1050_v55, %v2967_v48  ;;  %v1075_v56 = vmul.f32 %v1051_v44, %v2971_v6  ;;  %v1092_v59 = vadd.f32 0.008333331, %v1068_v8 }
 0x194   : > { %v3015_v57 = vmul.f32 %v2457_v30, %v2912_v23  ;;  %v1093_v16 = vadd.f32 0.008333331, %v1069_v31  ;;  %v1094_v1 = vadd.f32 0.008333331, %v1070_v51  ;;  %v1095_v4 = vadd.f32 0.008333331, %v1071_v12 }
 0x195   : > { %v1096_v41 = vadd.f32 0.008333331, %v1072_v9  ;;  %v1097_v19 = vadd.f32 0.008333331, %v1073_v32  ;;  %v1098_v37 = vadd.f32 0.008333331, %v1074_v22  ;;  %v1116_v10 = vmul.f32 %v1092_v59, %v2943_v0 }
 0x196   : > { %v1099_v28 = vadd.f32 0.008333331, %v1075_v56  ;;  %v1117_v21 = vmul.f32 %v1093_v16, %v2947_v18  ;;  %v1118_v35 = vmul.f32 %v1094_v1, %v2951_v45  ;;  %v1119_v60 = vmul.f32 %v1095_v4, %v2955_v33 }
 0x197   : > { %v1120_v26 = vmul.f32 %v1096_v41, %v2959_v42  ;;  %v1121_v30 = vmul.f32 %v1097_v19, %v2963_v15  ;;  %v1122_v23 = vmul.f32 %v1098_v37, %v2967_v48  ;;  %v1140_v53 = vadd.f32 -0.16666667, %v1116_v10 }
 0x198   : > { %v1123_v54 = vmul.f32 %v1099_v28, %v2971_v6  ;;  %v1141_v7 = vadd.f32 -0.16666667, %v1117_v21  ;;  %v1142_v46 = vadd.f32 -0.16666667, %v1118_v35  ;;  %v1143_v39 = vadd.f32 -0.16666667, %v1119_v60 }
 0x199   : > { %v1144_v47 = vadd.f32 -0.16666667, %v1120_v26  ;;  %v1145_v11 = vadd.f32 -0.16666667, %v1121_v30  ;;  %v1146_v34 = vadd.f32 -0.16666667, %v1122_v23  ;;  %v1164_v27 = vmul.f32 %v1140_v53, %v2943_v0 }
 0x19a   : > { %v1147_v14 = vadd.f32 -0.16666667, %v1123_v54  ;;  %v1165_v50 = vmul.f32 %v1141_v7, %v2947_v18  ;;  %v1166_v25 = vmul.f32 %v1142_v46, %v2951_v45  ;;  %v1167_v49 = vmul.f32 %v1143_v39, %v2955_v33  ;;  %v1236_v33 = vpop.permute.xlu0 %1235 }
 0x19b   : > { %v1168_v43 = vmul.f32 %v1144_v47, %v2959_v42  ;;  %v1169_v24 = vmul.f32 %v1145_v11, %v2963_v15  ;;  %v1170_v55 = vmul.f32 %v1146_v34, %v2967_v48  ;;  %v1188_v44 = vadd.f32 1.0, %v1164_v27 }
 0x19c   : > { %v1171_v8 = vmul.f32 %v1147_v14, %v2971_v6  ;;  %v1189_v31 = vadd.f32 1.0, %v1165_v50  ;;  %v1190_v51 = vadd.f32 1.0, %v1166_v25  ;;  %v1191_v0 = vadd.f32 1.0, %v1167_v49 }
 0x19d   : > { %v1192_v12 = vadd.f32 1.0, %v1168_v43  ;;  %v1193_v9 = vadd.f32 1.0, %v1169_v24  ;;  %v1194_v18 = vadd.f32 1.0, %v1170_v55  ;;  %v1212_v45 = vmul.f32 %v1188_v44, %v2925_v52 }
 0x19e   : > { %v1195_v32 = vadd.f32 1.0, %v1171_v8  ;;  %v1213_v42 = vmul.f32 %v1189_v31, %v2927_v13  ;;  %v1214_v15 = vmul.f32 %v1190_v51, %v2929_v62  ;;  %v1215_v48 = vmul.f32 %v1191_v0, %v2931_v3 }
 0x19f   : > { %v1216_v6 = vmul.f32 %v1192_v12, %v2933_v17  ;;  %v1217_v22 = vmul.f32 %v1193_v9, %v2935_v63  ;;  %v1218_v56 = vmul.f32 %v1194_v18, %v2937_v58  ;;  %v1251_v59 = vmul.f32 %v1236_v33, %v1212_v45 }
 0x1a0   : > { %v1219_v16 = vmul.f32 %v1195_v32, %v2939_v29  ;;  %v1252_v1 = vmul.f32 %v1236_v33, %v1213_v42  ;;  %v1253_v52 = vmul.f32 %v1236_v33, %v1214_v15  ;;  %v1254_v4 = vmul.f32 %v1236_v33, %v1215_v48 }
 0x1a1   : > { %v1255_v13 = vmul.f32 %v1236_v33, %v1216_v6  ;;  %v1256_v62 = vmul.f32 %v1236_v33, %v1217_v22  ;;  %v1257_v3 = vmul.f32 %v1236_v33, %v1218_v56  ;;  %v1275_v17 = vadd.f32 %v1251_v59, %v2909_v5 }
 0x1a2   : > { %v1258_v63 = vmul.f32 %v1236_v33, %v1219_v16  ;;  %v1276_v58 = vadd.f32 %v1252_v1, %v2923_v20  ;;  %v1277_v29 = vadd.f32 %v1253_v52, %v2976_v40  ;;  %v1278_v41 = vadd.f32 %v1254_v4, %v2982_v61 }
 0x1a3   : > { %v1279_v19 = vadd.f32 %v1255_v13, %v2988_v2  ;;  %v1280_v5 = vadd.f32 %v1256_v62, %v2991_v38  ;;  %v1281_v37 = vadd.f32 %v1257_v3, %v3003_v36  ;;  %1299 = vst [vmem:[%s2488_s4 + $0x40] sm:$0xff] %v1275_v17 }
 0x1a4   : > { %v1282_v20 = vadd.f32 %v1258_v63, %v3015_v57  ;;  %1300 = vst [vmem:[%s2488_s4 + $0x48] sm:$0xff] %v1276_v58  ;;  %1301 = vst [vmem:[%s2488_s4 + $0x50] sm:$0xff] %v1277_v29 }
 0x1a5   : > { %1302 = vst [vmem:[%s2488_s4 + $0x58] sm:$0xff] %v1278_v41  ;;  %1303 = vst [vmem:[%s2488_s4 + $0x60] sm:$0xff] %v1279_v19 }
 0x1a6   : > { %1304 = vst [vmem:[%s2488_s4 + $0x68] sm:$0xff] %v1280_v5  ;;  %1305 = vst [vmem:[%s2488_s4 + $0x70] sm:$0xff] %v1281_v37 }
 0x1a7   : > { %1306 = vst [vmem:[%s2488_s4 + $0x78] sm:$0xff] %v1282_v20 }
 0x1a8   : > { %1466 = shalt.err (!%p1463_p3)
}
 0x1a9   : > { %s1467_s23 = scalar_lea.hbm %s3050_s8, 3072  ;;  %s1471_s26 = scalar_lea.hbm %s3110_s2, 6144 }
 0x1aa   : > { %p1468_p4 = scmp.ne.s32.totalorder %s3050_s8, %s1467_s23  ;;  %p1472_p9 = scmp.lt.s32.totalorder %s3050_s8, %s3110_s2 }
 0x1ab   : > { %p1473_p10 = scmp.lt.s32.totalorder %s1471_s26, %s1467_s23 }
 0x1ac   : > { %p1469_p7 = pnand %p1468_p4, %p1573_p5 }
 0x1ad   : > { %p1474_p11 = por %p1473_p10, %p1472_p9 }
 0x1ae   : > { %p1470_p8 = pneg %p1469_p7 }
 0x1b0   : > { %p1475_p12 = pnand %p1474_p11, %p1470_p8 }
 0x1b2   : > { %1478 = shalt.err (!%p1475_p12)
}
 0x1b3   : > { %s1517_s29 = smov 1024   ;;  %s1518_s30 = smov 2048  }
 0x1b4   : > { %s1519_s3 = smov 64  }
 0x1b5   : > { %1408 = dma.vmem_to_hbm [thread:$0]  (%p1573_p5), %s3056_s6, 3072, %s3050_s8, %s3068_s14, %s1517_s29, %s1518_s30, %s1519_s3  }
 0x1b6 PF: > { %p1414_p13 = scmp.ge.s32.totalorder %s1513_s12, 2  ;;  %s1344_s4 = sand.u32 1, %s1501_s9  }
 0x1b7   : > { %s1345_s5 = scalar_lea.sflag [#allocation3], %s1344_s4 }
 0x1b8   : > { %p1411_p0 = pnand %p1414_p13, %p1577_p6 }
 0x1ba   : > { %p1412_p1 = pneg %p1411_p0 }
 0x1bc   : > { %1496 = dma.done.wait (%p1412_p1), %s1345_s5, 3072  }
 0x1bd   : > { %1498 = vsyncadd (%p1412_p1), %s1345_s5, 4294964224  ;;  %p12_p2 = scmp.ge.s32.totalorder %s1560_s15, 4   ;;  %s3450_s9 = smov %s1505_s10 }
 0x1be   : > { %s3451_s10 = smov %s1509_s11  ;;  %s3452_s11 = smov %s1571_s18 }
 0x1bf   : > { %s3453_s12 = smov %s1560_s15  ;;  %14 = sbr.rel (!%p12_p2) target bundleno = 3 (0x3), region = 66 }
 0x1c4   :  { %1350 = vsyncpa [#allocation3], 1 }
 0x1c5   :  { %1352 = vsyncpa [#allocation3 + $0x1], 1 }

</bundles_post_ra>
